<compile_context>
chip_gen: v7x
topology: tpu7x:2x2x1
jax: 0.10.0
libtpu: 0.0.40
codegen_flags: <defaults>
</compile_context>

<pallas_src>
import functools

import numpy as np
import jax
import jax.numpy as jnp
from jax.experimental import pallas as pl
from jax.experimental.pallas import tpu as pltpu

SMEM_SPEC = pl.BlockSpec(memory_space=pltpu.MemorySpace.SMEM)

_NEG_INF = -1e30
_EPS = 1e-7          # guards degenerate / padded boxes in GIoU (ref asserts instead)

# lane assignment inside the (1, 128) accumulator / output row
_L_CE, _L_ERR, _L_CONF, _L_BBOX, _L_GIOU, _L_HUM, _L_OBJ, _L_UNI = range(8)


def _round_up(x, m):
    return ((x + m - 1) // m) * m


# ----------------------------------------------------------------------------
# Fused loss kernel, gridded over M-tiles (axis 0, "arbitrary").
#   SMEM: counts[1] int32 (=M), fscal[4] f32 (1/M, 1/num_boxes, 1/(B*Q), 1/(M*HW))
#   per-tile VMEM: logits [TILE_M,Cpad] bf16, tgt/batch idx [TILE_M,1] i32,
#                  tgt hum/obj masks [TILE_M,HW] int8|bf16
#   resident VMEM: conf x/t/w [1,Lc] f32, src/tgt boxes [8,Lb] f32,
#                  pred hum/obj/uni [B,HW] bf16
#   scratch: acc (1,128) f32 ; output: packed losses, lane-dense (1,128) f32
# ----------------------------------------------------------------------------
def _fused_loss_kernel(counts_ref, fscal_ref,
                       logits_ref, tgt_idx_ref, bidx_ref,
                       conf_x_ref, conf_t_ref, conf_w_ref,
                       src_box_ref, tgt_box_ref,
                       hum_ref, obj_ref, uni_ref, th_ref, to_ref,
                       out_ref, acc_ref):
    step = pl.program_id(0)
    last = pl.num_programs(0) - 1
    n_valid = counts_ref[0]

    tile_m = logits_ref.shape[0]
    lane = jax.lax.broadcasted_iota(jnp.int32, (1, 128), 1)

    # ------- step 0: init accumulator + fold in the small, tile-independent terms ----
    @pl.when(step == 0)
    def _():
        # confidence: weighted BCE on sigmoid(scores) == BCE-with-logits on raw scores
        cx = conf_x_ref[...]
        ct = conf_t_ref[...]
        cwt = conf_w_ref[...]                                  # 0 on padded lanes
        sp = jnp.maximum(cx, 0.0) + jnp.log1p(jnp.exp(-jnp.abs(cx)))   # softplus
        log_p = jnp.maximum(cx - sp, -100.0)                   # torch BCE clamps at -100
        log_1mp = jnp.maximum(-sp, -100.0)
        conf_s = jnp.sum(-cwt * (ct * log_p + (1.0 - ct) * log_1mp))

        # boxes: L1 + GIoU, lane-dense [8, Lb] layout (coords on sublanes, pairs on lanes)
        sb = src_box_ref[...]
        tb = tgt_box_ref[...]
        lb = sb.shape[1]
        lane_ids = jax.lax.broadcasted_iota(jnp.int32, (1, lb), 1)
        lane_mask = (lane_ids < n_valid).astype(jnp.float32)
        bbox_s = jnp.sum(jnp.abs(sb - tb) * lane_mask)

        def _to_xyxy(b):                                       # b: [4, Lb] cxcywh rows
            bcx, bcy, bw, bh = b[0:1], b[1:2], b[2:3], b[3:4]
            return bcx - 0.5 * bw, bcy - 0.5 * bh, bcx + 0.5 * bw, bcy + 0.5 * bh

        def _giou(a, b):                                       # matched-pair GIoU [1, Lb]
            ax1, ay1, ax2, ay2 = _to_xyxy(a)
            bx1, by1, bx2, by2 = _to_xyxy(b)
            area_a = (ax2 - ax1) * (ay2 - ay1)
            area_b = (bx2 - bx1) * (by2 - by1)
            iw = jnp.maximum(jnp.minimum(ax2, bx2) - jnp.maximum(ax1, bx1), 0.0)
            ih = jnp.maximum(jnp.minimum(ay2, by2) - jnp.maximum(ay1, by1), 0.0)
            inter = iw * ih
            union = area_a + area_b - inter
            iou = inter * pl.reciprocal(union + _EPS, approx=True)
            enc_w = jnp.maximum(ax2, bx2) - jnp.minimum(ax1, bx1)
            enc_h = jnp.maximum(ay2, by2) - jnp.minimum(ay1, by1)
            area_c = enc_w * enc_h
            return iou - (area_c - union) * pl.reciprocal(area_c + _EPS, approx=True)

        g_p = _giou(sb[0:4], tb[0:4])
        g_o = _giou(sb[4:8], tb[4:8])
        giou_s = (jnp.sum((1.0 - g_p) * lane_mask) + jnp.sum((1.0 - g_o) * lane_mask))

        init = jnp.where(lane == _L_CONF, conf_s, 0.0)
        init = jnp.where(lane == _L_BBOX, bbox_s, init)
        init = jnp.where(lane == _L_GIOU, giou_s, init)
        acc_ref[...] = init

    # ------- per-tile: classification CE + top-1 accuracy ----------------------------
    x = logits_ref[...].astype(jnp.float32)                    # [TILE_M, Cpad]
    cpad = x.shape[1]
    tgt_idx = tgt_idx_ref[...]                                 # [TILE_M, 1] int32
    row_ids = step * tile_m + jax.lax.broadcasted_iota(jnp.int32, (tile_m, 1), 0)
    row_mask = (row_ids < n_valid).astype(jnp.float32)         # padded matches -> 0

    cls_iota = jax.lax.broadcasted_iota(jnp.int32, (tile_m, cpad), 1)
    sel = cls_iota == tgt_idx                                  # one-hot w/o materialization
    rowmax = jnp.max(x, axis=-1, keepdims=True)
    lse = rowmax + jnp.log(jnp.sum(jnp.exp(x - rowmax), axis=-1, keepdims=True))
    tgt_logit = jnp.sum(jnp.where(sel, x, 0.0), axis=-1, keepdims=True)
    ce_s = jnp.sum((lse - tgt_logit) * row_mask)
    # reuse rowmax for top-1 (float logits: ties measure-zero) -> one fewer XLU pass
    corr_s = jnp.sum((tgt_logit >= rowmax).astype(jnp.float32) * row_mask)

    # ------- per-tile: mask-region BCE with logits ------------------------------------
    # Select the per-match prediction rows from the resident [B, HW] maps with a tiny
    # one-hot matmul on the idle MXU (no [Mpad, HW] duplicated gather in HBM).
    bidx = bidx_ref[...]                                       # [TILE_M, 1] int32
    nbatch = hum_ref.shape[0]
    b_iota = jax.lax.broadcasted_iota(jnp.int32, (tile_m, nbatch), 1)
    onehot = (b_iota == bidx).astype(hum_ref.dtype)            # [TILE_M, B]
    ph = jnp.dot(onehot, hum_ref[...], preferred_element_type=jnp.float32)
    po = jnp.dot(onehot, obj_ref[...], preferred_element_type=jnp.float32)
    pu = jnp.dot(onehot, uni_ref[...], preferred_element_type=jnp.float32)

    th = th_ref[...].astype(jnp.float32)                       # int8/bf16 -> f32
    to = to_ref[...].astype(jnp.float32)
    tu = jnp.maximum(th, to)

    def _bce_logits_sum(xv, tv):
        l = jnp.maximum(xv, 0.0) - xv * tv + jnp.log1p(jnp.exp(-jnp.abs(xv)))
        return jnp.sum(l * row_mask)                           # mask padded rows

    hum_s = _bce_logits_sum(ph, th)
    obj_s = _bce_logits_sum(po, to)
    uni_s = _bce_logits_sum(pu, tu)

    delta = jnp.where(lane == _L_CE, ce_s, 0.0)
    delta = jnp.where(lane == _L_ERR, corr_s, delta)
    delta = jnp.where(lane == _L_HUM, hum_s, delta)
    delta = jnp.where(lane == _L_OBJ, obj_s, delta)
    delta = jnp.where(lane == _L_UNI, uni_s, delta)
    acc_ref[...] += delta

    # ------- last step: normalize and emit one lane-dense (1,128) row -----------------
    @pl.when(step == last)
    def _():
        inv_valid = fscal_ref[0]
        inv_nb = fscal_ref[1]
        inv_conf = fscal_ref[2]
        inv_mask = fscal_ref[3]
        acc = acc_ref[...]
        scale = jnp.where(lane <= _L_ERR, inv_valid, inv_mask)
        scale = jnp.where(lane == _L_CONF, inv_conf, scale)
        scale = jnp.where((lane == _L_BBOX) | (lane == _L_GIOU), inv_nb, scale)
        scaled = acc * scale
        out_ref[...] = jnp.where(lane == _L_ERR, 100.0 - 100.0 * scaled, scaled)


# ----------------------------------------------------------------------------
# One jitted device function: on-device gathers, padding and the single fused,
# gridded pallas_call.
# ----------------------------------------------------------------------------
@functools.partial(jax.jit, static_argnames=("tile_m",))
def _fused_losses_device(logits, pred_boxes, box_scores, hum, obj, uni,
                         tgt_boxes_all, tgt_masks_all,
                         batch_idx, src_idx, pid_idx, oid_idx, tgt_cls,
                         counts, fscal, eos_coef, *, tile_m):
    B, Q, C = logits.shape
    mpad = batch_idx.shape[0]
    cpad = _round_up(C, 128)
    lb = _round_up(mpad, 128)
    lc = _round_up(B * Q, 128)
    HW = hum.shape[-2] * hum.shape[-1]
    n_tiles = mpad // tile_m

    # ---- matched-prediction gathers (padded indices point at (0,0); masked in-kernel)
    src_logits = logits[batch_idx, src_idx].astype(jnp.bfloat16)        # [Mpad, C] bf16
    src_logits = jnp.pad(src_logits, ((0, 0), (0, cpad - C)),
                         constant_values=_NEG_INF)                       # [Mpad, Cpad]

    src_boxes = pred_boxes[batch_idx, src_idx].astype(jnp.float32)      # [Mpad, 8]
    src_boxes_t = jnp.zeros((8, lb), jnp.float32).at[:, :mpad].set(src_boxes.T)

    # ---- target-side gathers stay on device (only small index vectors come from host)
    tb_p = tgt_boxes_all[batch_idx, pid_idx]                             # [Mpad, 4]
    tb_o = tgt_boxes_all[batch_idx, oid_idx]
    tgt_boxes = jnp.concatenate([tb_p, tb_o], axis=-1).astype(jnp.float32)
    tgt_boxes_t = jnp.zeros((8, lb), jnp.float32).at[:, :mpad].set(tgt_boxes.T)

    masks_src = (tgt_masks_all if tgt_masks_all.dtype == jnp.int8
                 else tgt_masks_all.astype(jnp.bfloat16))
    tgt_hum = masks_src[batch_idx, pid_idx]                              # [Mpad, HW]
    tgt_obj = masks_src[batch_idx, oid_idx]

    # ---- confidence target / weight rows (device scatter-max; padded matches no-op)
    valid = (jnp.arange(mpad) < counts[0]).astype(jnp.float32)
    flat = batch_idx * Q + src_idx
    matched = jnp.zeros((B * Q,), jnp.float32).at[flat].max(valid)
    conf_t = jnp.zeros((1, lc), jnp.float32).at[0, :B * Q].set(matched)
    conf_w = jnp.zeros((1, lc), jnp.float32).at[0, :B * Q].set(
        eos_coef + (1.0 - eos_coef) * matched)
    conf_x = jnp.zeros((1, lc), jnp.float32).at[0, :B * Q].set(
        box_scores.reshape(-1).astype(jnp.float32))

    # ---- prediction masks stay [B, HW] bf16 (resident in VMEM; rows picked in-kernel)
    hum2 = hum.reshape(B, HW).astype(jnp.bfloat16)
    obj2 = obj.reshape(B, HW).astype(jnp.bfloat16)
    uni2 = uni.reshape(B, HW).astype(jnp.bfloat16)

    # ---- VMEM budget + cost estimate -------------------------------------------------
    tgt_isz = tgt_hum.dtype.itemsize
    block_bytes = tile_m * cpad * 2 + 2 * tile_m * 4 + 2 * tile_m * HW * tgt_isz
    resident_bytes = 3 * B * HW * 2 + 3 * lc * 4 + 2 * 8 * lb * 4 + 2 * 128 * 4
    interm_bytes = 8 * tile_m * max(HW, cpad) * 4
    vmem_limit = int(min(64 * 1024 * 1024,
                         max(16 * 1024 * 1024,
                             4 * block_bytes + 2 * resident_bytes + interm_bytes)))
    cost = pl.CostEstimate(
        flops=int(10 * 3 * mpad * HW + 6 * mpad * cpad + 6 * mpad * B * HW + 60 * mpad),
        transcendentals=int(6 * mpad * HW + mpad * cpad + 2 * B * Q),
        bytes_accessed=int(3 * B * HW * 2 + 2 * mpad * HW * tgt_isz
                           + mpad * cpad * 2 + 3 * lc * 4 + 4 * 8 * lb * 4 + 512))

    grid_spec = pltpu.PrefetchScalarGridSpec(
        num_scalar_prefetch=0,
        grid=(n_tiles,),
        in_specs=[
            SMEM_SPEC, SMEM_SPEC,
            pl.BlockSpec((tile_m, cpad), lambda m: (m, 0)),     # class logits (tiled)
            pl.BlockSpec((tile_m, 1), lambda m: (m, 0)),        # target class ids
            pl.BlockSpec((tile_m, 1), lambda m: (m, 0)),        # batch index per match
            pl.BlockSpec((1, lc), lambda m: (0, 0)),            # conf scores
            pl.BlockSpec((1, lc), lambda m: (0, 0)),            # conf targets
            pl.BlockSpec((1, lc), lambda m: (0, 0)),            # conf weights
            pl.BlockSpec((8, lb), lambda m: (0, 0)),            # src boxes (lane-dense)
            pl.BlockSpec((8, lb), lambda m: (0, 0)),            # tgt boxes (lane-dense)
            pl.BlockSpec((B, HW), lambda m: (0, 0)),            # pred hum (resident)
            pl.BlockSpec((B, HW), lambda m: (0, 0)),            # pred obj (resident)
            pl.BlockSpec((B, HW), lambda m: (0, 0)),            # pred uni (resident)
            pl.BlockSpec((tile_m, HW), lambda m: (m, 0)),       # tgt hum mask (tiled)
            pl.BlockSpec((tile_m, HW), lambda m: (m, 0)),       # tgt obj mask (tiled)
        ],
        out_specs=pl.BlockSpec((1, 128), lambda m: (0, 0)),
        scratch_shapes=[pltpu.VMEM((1, 128), jnp.float32)],
    )

    out = pl.pallas_call(
        _fused_loss_kernel,
        out_shape=jax.ShapeDtypeStruct((1, 128), jnp.float32),
        grid_spec=grid_spec,
        compiler_params=pltpu.CompilerParams(
            dimension_semantics=("arbitrary",),
            vmem_limit_bytes=vmem_limit),
        cost_estimate=cost,
    )(counts, fscal,
      src_logits, tgt_cls.reshape(mpad, 1), batch_idx.reshape(mpad, 1),
      conf_x, conf_t, conf_w,
      src_boxes_t, tgt_boxes_t,
      hum2, obj2, uni2, tgt_hum, tgt_obj)
    return out[0]


# ----------------------------------------------------------------------------
# SetCriterion wrapper (dict/python glue on host; all loss math in one kernel)
# ----------------------------------------------------------------------------
class SetCriterionPallas:
    def __init__(self, matcher, weight_dict, eos_coef, losses,
                 max_matches=8, mask_tile_m=16):
        # mask_tile_m: M rows streamed per grid step for the mask BCE.
        #   v7x (64 MiB VMEM): keep 16-32.  v5e/v6e (128 MiB): 32-64 is fine.
        self.matcher = matcher
        self.weight_dict = weight_dict
        self.eos_coef = eos_coef
        self.losses = losses
        tile = _round_up(min(mask_tile_m, _round_up(max(int(max_matches), 1), 8)), 8)
        self.tile_m = tile
        self.max_matches = _round_up(max(int(max_matches), 1), tile)
        # int8 targets need 32-sublane-friendly tiles (or block == full array)
        self._use_int8_masks = (self.tile_m % 32 == 0) or (self.tile_m == self.max_matches)
        self.training = False  # eval-mode classification path (see TODO at top)

    @staticmethod
    def _src_permutation_idx(indices):
        batch_idx = np.concatenate(
            [np.full_like(np.asarray(src), i) for i, (src, _) in enumerate(indices)])
        src_idx = np.concatenate([np.asarray(src) for src, _ in indices])
        return batch_idx.astype(np.int64), src_idx.astype(np.int64)

    def forward(self, outputs, targets):
        indices = self.matcher(outputs, targets)
        batch_idx, src_idx = self._src_permutation_idx(indices)
        M = int(batch_idx.shape[0])
        assert 1 <= M <= self.max_matches, "increase max_matches"
        Mpad = self.max_matches

        logits = outputs["logits_per_hoi"]
        B, Q, _ = logits.shape
        H, W = outputs["hum_region"].shape[-2:]
        HW = H * W

        num_boxes = float(max(sum(len(t["hois"]) for t in targets), 1))
        # TODO(synk): distributed all-reduce / world-size clamp of num_boxes omitted.

        # small per-match index vectors (the only per-forward host work)
        b_pad = np.zeros((Mpad,), np.int32); b_pad[:M] = batch_idx
        s_pad = np.zeros((Mpad,), np.int32); s_pad[:M] = src_idx
        p_pad = np.zeros((Mpad,), np.int32)
        o_pad = np.zeros((Mpad,), np.int32)
        c_pad = np.zeros((Mpad,), np.int32)
        m = 0
        for t, (_, tgt_i) in zip(targets, indices):
            for i in tgt_i:
                hoi = t["hois"][int(i)]
                p_pad[m] = hoi["subject_id"]
                o_pad[m] = hoi["object_id"]
                c_pad[m] = hoi["hoi_id"]           # eval-mode label path
                m += 1

        # stacked per-image target tensors (in real training these would live on
        # device already; this per-forward build/upload is demo glue only)
        mask_np_dtype = np.int8 if self._use_int8_masks else np.float32
        Gmax = max(len(t["boxes"]) for t in targets)
        boxes_all = np.zeros((B, Gmax, 4), np.float32)
        masks_all = np.zeros((B, Gmax, HW), mask_np_dtype)
        for bi, t in enumerate(targets):
            g = len(t["boxes"])
            boxes_all[bi, :g] = np.asarray(t["boxes"], np.float32)
            masks_all[bi, :g] = np.asarray(t["mask_region_hw"],
                                           np.float32).reshape(g, HW)

        counts = np.array([M], np.int32)
        fscal = np.array([1.0 / M, 1.0 / num_boxes, 1.0 / (B * Q),
                          1.0 / (M * HW)], np.float32)

        packed = _fused_losses_device(
            logits, outputs["pred_boxes"], outputs["box_scores"],
            outputs["hum_region"], outputs["obj_region"], outputs["uni_region"],
            jnp.asarray(boxes_all), jnp.asarray(masks_all),
            jnp.asarray(b_pad), jnp.asarray(s_pad), jnp.asarray(p_pad),
            jnp.asarray(o_pad), jnp.asarray(c_pad),
            jnp.asarray(counts), jnp.asarray(fscal),
            float(self.eos_coef),
            tile_m=self.tile_m)

        all_losses = {
            "loss_ce": packed[_L_CE], "class_error": packed[_L_ERR],
            "loss_conf": packed[_L_CONF], "loss_bbox": packed[_L_BBOX],
            "loss_giou": packed[_L_GIOU], "loss_hum_mask": packed[_L_HUM],
            "loss_obj_mask": packed[_L_OBJ], "loss_uni_mask": packed[_L_UNI],
        }
        name_to_keys = {
            "labels": ["loss_ce", "class_error"],
            "confidences": ["loss_conf"],
            "boxes": ["loss_bbox", "loss_giou"],
            "masks": ["loss_hum_mask", "loss_obj_mask", "loss_uni_mask"],
        }
        losses = {}
        for name in self.losses:
            for k in name_to_keys[name]:
                losses[k] = all_losses[k]
        # TODO(synk): aux_outputs branch skipped (no aux decoder layers here).
        return losses, indices


# ----------------------------------------------------------------------------
# Example run
# ----------------------------------------------------------------------------
if __name__ == "__main__":
    B, Q, C, H, W = 2, 8, 16, 16, 16

    key = jax.random.PRNGKey(0)
    ks = jax.random.split(key, 12)
    outputs = {
        "logits_per_hoi": jax.random.normal(ks[0], (B, Q, C), jnp.float32),
        "pred_boxes": jax.nn.sigmoid(jax.random.normal(ks[1], (B, Q, 8), jnp.float32)),
        "box_scores": jax.random.normal(ks[2], (B, Q), jnp.float32),
        "hum_region": jax.random.normal(ks[3], (B, H, W), jnp.float32),
        "obj_region": jax.random.normal(ks[4], (B, H, W), jnp.float32),
        "uni_region": jax.random.normal(ks[5], (B, H, W), jnp.float32),
    }

    # deterministic synthetic targets: 3 gt boxes and 2 HOIs per image
    def make_target(kb, km, hois):
        ctr = np.asarray(jax.random.uniform(kb, (3, 2), minval=0.3, maxval=0.7))
        wh = np.asarray(jax.random.uniform(km, (3, 2), minval=0.1, maxval=0.3))
        boxes = np.concatenate([ctr, wh], axis=-1).astype(np.float32)       # cxcywh
        masks = np.asarray(jax.random.bernoulli(km, 0.5, (3, H, W)), dtype=np.float32)
        return {"boxes": boxes, "mask_region_hw": masks, "hois": hois}

    targets = [
        make_target(ks[6], ks[7], [
            {"subject_id": 0, "object_id": 1, "hoi_id": 3},
            {"subject_id": 0, "object_id": 2, "hoi_id": 7},
        ]),
        make_target(ks[8], ks[9], [
            {"subject_id": 1, "object_id": 0, "hoi_id": 5},
            {"subject_id": 2, "object_id": 1, "hoi_id": 3},
        ]),
    ]

    # deterministic dummy matcher (stands in for the Hungarian matcher)
    def dummy_matcher(outputs, targets):
        return [
            (np.array([1, 3], dtype=np.int64), np.array([0, 1], dtype=np.int64)),
            (np.array([0, 5], dtype=np.int64), np.array([1, 0], dtype=np.int64)),
        ]

    criterion = SetCriterionPallas(
        matcher=dummy_matcher,
        weight_dict={"loss_ce": 1.0, "loss_bbox": 5.0, "loss_giou": 2.0,
                     "loss_conf": 1.0, "loss_hum_mask": 1.0, "loss_obj_mask": 1.0,
                     "loss_uni_mask": 1.0},
        eos_coef=0.1,
        losses=["labels", "boxes", "confidences", "masks"],
        max_matches=8,
        mask_tile_m=16,
    )

    losses, indices = criterion.forward(outputs, targets)
    losses = {k: jax.block_until_ready(v) for k, v in losses.items()}
    for k, v in losses.items():
        assert np.isfinite(float(v)), f"non-finite loss {k}"
    print("KERNEL_OK")
</pallas_src>

<mosaic_0001>
module attributes {stable_mosaic.version = 11 : i64} {
  func.func @_fused_loss_kernel(%arg0: i32, %arg1: memref<1xi32, #tpu.memory_space<smem>>, %arg2: memref<4xf32, #tpu.memory_space<smem>>, %arg3: memref<8x128xbf16, #tpu.memory_space<vmem>>, %arg4: memref<8x1xi32, #tpu.memory_space<vmem>>, %arg5: memref<8x1xi32, #tpu.memory_space<vmem>>, %arg6: memref<1x128xf32, #tpu.memory_space<vmem>>, %arg7: memref<1x128xf32, #tpu.memory_space<vmem>>, %arg8: memref<1x128xf32, #tpu.memory_space<vmem>>, %arg9: memref<8x128xf32, #tpu.memory_space<vmem>>, %arg10: memref<8x128xf32, #tpu.memory_space<vmem>>, %arg11: memref<2x256xbf16, #tpu.memory_space<vmem>>, %arg12: memref<2x256xbf16, #tpu.memory_space<vmem>>, %arg13: memref<2x256xbf16, #tpu.memory_space<vmem>>, %arg14: memref<8x256xi8, #tpu.memory_space<vmem>>, %arg15: memref<8x256xi8, #tpu.memory_space<vmem>>, %arg16: memref<1x128xf32, #tpu.memory_space<vmem>>, %arg17: memref<1x128xf32, #tpu.memory_space<vmem>>) attributes {dimension_semantics = [#tpu.dimension_semantics<arbitrary>], iteration_bounds = array<i64: 1>, scalar_prefetch = 0 : i64, scratch_operands = 1 : i64, tpu.core_type = #tpu.core_type<tc>, window_params = [{transform_indices = @transform_0, window_bounds = array<i64: 1>}, {transform_indices = @transform_1, window_bounds = array<i64: 4>}, {transform_indices = @transform_2, window_bounds = array<i64: 8, 128>}, {transform_indices = @transform_3, window_bounds = array<i64: 8, 1>}, {transform_indices = @transform_4, window_bounds = array<i64: 8, 1>}, {pipeline_mode = #tpu.pipeline_mode<synchronous>, transform_indices = @transform_5, window_bounds = array<i64: 1, 128>}, {pipeline_mode = #tpu.pipeline_mode<synchronous>, transform_indices = @transform_6, window_bounds = array<i64: 1, 128>}, {pipeline_mode = #tpu.pipeline_mode<synchronous>, transform_indices = @transform_7, window_bounds = array<i64: 1, 128>}, {pipeline_mode = #tpu.pipeline_mode<synchronous>, transform_indices = @transform_8, window_bounds = array<i64: 8, 128>}, {pipeline_mode = #tpu.pipeline_mode<synchronous>, transform_indices = @transform_9, window_bounds = array<i64: 8, 128>}, {pipeline_mode = #tpu.pipeline_mode<synchronous>, transform_indices = @transform_10, window_bounds = array<i64: 2, 256>}, {pipeline_mode = #tpu.pipeline_mode<synchronous>, transform_indices = @transform_11, window_bounds = array<i64: 2, 256>}, {pipeline_mode = #tpu.pipeline_mode<synchronous>, transform_indices = @transform_12, window_bounds = array<i64: 2, 256>}, {transform_indices = @transform_13, window_bounds = array<i64: 8, 256>}, {transform_indices = @transform_14, window_bounds = array<i64: 8, 256>}, {pipeline_mode = #tpu.pipeline_mode<synchronous>, transform_indices = @transform_15, window_bounds = array<i64: 1, 128>}]} {
    %c0 = arith.constant 0 : index
    %0 = memref.load %arg1[%c0] : memref<1xi32, #tpu.memory_space<smem>>
    %1 = tpu.iota {dimensions = array<i32: 1>} : vector<1x128xi32>
    %c0_i32 = arith.constant 0 : i32
    %2 = arith.cmpi eq, %arg0, %c0_i32 : i32
    %3 = arith.extui %2 : i1 to i32
    %c0_i32_0 = arith.constant 0 : i32
    %4 = arith.cmpi ne, %3, %c0_i32_0 : i32
    scf.if %4 {
      %c0_42 = arith.constant 0 : index
      %c0_43 = arith.constant 0 : index
      %139 = vector.load %arg6[%c0_42, %c0_43] : memref<1x128xf32, #tpu.memory_space<vmem>>, vector<1x128xf32>
      %c0_44 = arith.constant 0 : index
      %c0_45 = arith.constant 0 : index
      %140 = vector.load %arg7[%c0_44, %c0_45] : memref<1x128xf32, #tpu.memory_space<vmem>>, vector<1x128xf32>
      %c0_46 = arith.constant 0 : index
      %c0_47 = arith.constant 0 : index
      %141 = vector.load %arg8[%c0_46, %c0_47] : memref<1x128xf32, #tpu.memory_space<vmem>>, vector<1x128xf32>
      %cst_48 = arith.constant 0.000000e+00 : f32
      %142 = vector.broadcast %cst_48 : f32 to vector<1x128xf32>
      %143 = arith.maximumf %139, %142 : vector<1x128xf32>
      %144 = math.absf %139 : vector<1x128xf32>
      %cst_49 = arith.constant 0.000000e+00 : f32
      %145 = vector.broadcast %cst_49 : f32 to vector<1x128xf32>
      %146 = arith.subf %145, %144 : vector<1x128xf32>
      %147 = math.exp %146 : vector<1x128xf32>
      %148 = math.log1p %147 : vector<1x128xf32>
      %149 = arith.addf %143, %148 : vector<1x128xf32>
      %150 = arith.subf %139, %149 : vector<1x128xf32>
      %cst_50 = arith.constant -1.000000e+02 : f32
      %151 = vector.broadcast %cst_50 : f32 to vector<1x128xf32>
      %152 = arith.maximumf %150, %151 : vector<1x128xf32>
      %cst_51 = arith.constant 0.000000e+00 : f32
      %153 = vector.broadcast %cst_51 : f32 to vector<1x128xf32>
      %154 = arith.subf %153, %149 : vector<1x128xf32>
      %cst_52 = arith.constant -1.000000e+02 : f32
      %155 = vector.broadcast %cst_52 : f32 to vector<1x128xf32>
      %156 = arith.maximumf %154, %155 : vector<1x128xf32>
      %cst_53 = arith.constant 0.000000e+00 : f32
      %157 = vector.broadcast %cst_53 : f32 to vector<1x128xf32>
      %158 = arith.subf %157, %141 : vector<1x128xf32>
      %159 = arith.mulf %140, %152 : vector<1x128xf32>
      %cst_54 = arith.constant 1.000000e+00 : f32
      %160 = vector.broadcast %cst_54 : f32 to vector<1x128xf32>
      %161 = arith.subf %160, %140 : vector<1x128xf32>
      %162 = arith.mulf %161, %156 : vector<1x128xf32>
      %163 = arith.addf %159, %162 : vector<1x128xf32>
      %164 = arith.mulf %158, %163 : vector<1x128xf32>
      %165 = vector.shape_cast %164 : vector<1x128xf32> to vector<1x1x128xf32>
      %cst_55 = arith.constant dense<0.000000e+00> : vector<1xf32>
      %166 = vector.multi_reduction <add>, %165, %cst_55 [1, 2] : vector<1x1x128xf32> to vector<1xf32>
      %167 = vector.shape_cast %166 : vector<1xf32> to vector<1x1x1xf32>
      %168 = vector.extract %167[0, 0, 0] : f32 from vector<1x1x1xf32>
      %c0_56 = arith.constant 0 : index
      %c0_57 = arith.constant 0 : index
      %169 = vector.load %arg9[%c0_56, %c0_57] : memref<8x128xf32, #tpu.memory_space<vmem>>, vector<8x128xf32>
      %c0_58 = arith.constant 0 : index
      %c0_59 = arith.constant 0 : index
      %170 = vector.load %arg10[%c0_58, %c0_59] : memref<8x128xf32, #tpu.memory_space<vmem>>, vector<8x128xf32>
      %171 = tpu.iota {dimensions = array<i32: 1>} : vector<1x128xi32>
      %172 = vector.broadcast %0 : i32 to vector<1x128xi32>
      %173 = arith.cmpi slt, %171, %172 : vector<1x128xi32>
      %174 = arith.extui %173 : vector<1x128xi1> to vector<1x128xi32>
      %175 = arith.sitofp %174 : vector<1x128xi32> to vector<1x128xf32>
      %176 = arith.subf %169, %170 : vector<8x128xf32>
      %177 = math.absf %176 : vector<8x128xf32>
      %178 = vector.broadcast %175 : vector<1x128xf32> to vector<8x128xf32>
      %179 = arith.mulf %177, %178 : vector<8x128xf32>
      %180 = vector.shape_cast %179 : vector<8x128xf32> to vector<1x8x128xf32>
      %cst_60 = arith.constant dense<0.000000e+00> : vector<1xf32>
      %181 = vector.multi_reduction <add>, %180, %cst_60 [1, 2] : vector<1x8x128xf32> to vector<1xf32>
      %182 = vector.shape_cast %181 : vector<1xf32> to vector<1x1x1xf32>
      %183 = vector.extract %182[0, 0, 0] : f32 from vector<1x1x1xf32>
      %184 = vector.extract_strided_slice %169 {offsets = [0, 0], sizes = [4, 128], strides = [1, 1]} : vector<8x128xf32> to vector<4x128xf32>
      %185 = vector.extract_strided_slice %170 {offsets = [0, 0], sizes = [4, 128], strides = [1, 1]} : vector<8x128xf32> to vector<4x128xf32>
      %186 = vector.extract_strided_slice %184 {offsets = [0, 0], sizes = [1, 128], strides = [1, 1]} : vector<4x128xf32> to vector<1x128xf32>
      %187 = vector.extract_strided_slice %184 {offsets = [1, 0], sizes = [1, 128], strides = [1, 1]} : vector<4x128xf32> to vector<1x128xf32>
      %188 = vector.extract_strided_slice %184 {offsets = [2, 0], sizes = [1, 128], strides = [1, 1]} : vector<4x128xf32> to vector<1x128xf32>
      %189 = vector.extract_strided_slice %184 {offsets = [3, 0], sizes = [1, 128], strides = [1, 1]} : vector<4x128xf32> to vector<1x128xf32>
      %cst_61 = arith.constant 5.000000e-01 : f32
      %190 = vector.broadcast %cst_61 : f32 to vector<1x128xf32>
      %191 = arith.mulf %190, %188 : vector<1x128xf32>
      %192 = arith.subf %186, %191 : vector<1x128xf32>
      %cst_62 = arith.constant 5.000000e-01 : f32
      %193 = vector.broadcast %cst_62 : f32 to vector<1x128xf32>
      %194 = arith.mulf %193, %189 : vector<1x128xf32>
      %195 = arith.subf %187, %194 : vector<1x128xf32>
      %cst_63 = arith.constant 5.000000e-01 : f32
      %196 = vector.broadcast %cst_63 : f32 to vector<1x128xf32>
      %197 = arith.mulf %196, %188 : vector<1x128xf32>
      %198 = arith.addf %186, %197 : vector<1x128xf32>
      %cst_64 = arith.constant 5.000000e-01 : f32
      %199 = vector.broadcast %cst_64 : f32 to vector<1x128xf32>
      %200 = arith.mulf %199, %189 : vector<1x128xf32>
      %201 = arith.addf %187, %200 : vector<1x128xf32>
      %202 = vector.extract_strided_slice %185 {offsets = [0, 0], sizes = [1, 128], strides = [1, 1]} : vector<4x128xf32> to vector<1x128xf32>
      %203 = vector.extract_strided_slice %185 {offsets = [1, 0], sizes = [1, 128], strides = [1, 1]} : vector<4x128xf32> to vector<1x128xf32>
      %204 = vector.extract_strided_slice %185 {offsets = [2, 0], sizes = [1, 128], strides = [1, 1]} : vector<4x128xf32> to vector<1x128xf32>
      %205 = vector.extract_strided_slice %185 {offsets = [3, 0], sizes = [1, 128], strides = [1, 1]} : vector<4x128xf32> to vector<1x128xf32>
      %cst_65 = arith.constant 5.000000e-01 : f32
      %206 = vector.broadcast %cst_65 : f32 to vector<1x128xf32>
      %207 = arith.mulf %206, %204 : vector<1x128xf32>
      %208 = arith.subf %202, %207 : vector<1x128xf32>
      %cst_66 = arith.constant 5.000000e-01 : f32
      %209 = vector.broadcast %cst_66 : f32 to vector<1x128xf32>
      %210 = arith.mulf %209, %205 : vector<1x128xf32>
      %211 = arith.subf %203, %210 : vector<1x128xf32>
      %cst_67 = arith.constant 5.000000e-01 : f32
      %212 = vector.broadcast %cst_67 : f32 to vector<1x128xf32>
      %213 = arith.mulf %212, %204 : vector<1x128xf32>
      %214 = arith.addf %202, %213 : vector<1x128xf32>
      %cst_68 = arith.constant 5.000000e-01 : f32
      %215 = vector.broadcast %cst_68 : f32 to vector<1x128xf32>
      %216 = arith.mulf %215, %205 : vector<1x128xf32>
      %217 = arith.addf %203, %216 : vector<1x128xf32>
      %218 = arith.subf %198, %192 : vector<1x128xf32>
      %219 = arith.subf %201, %195 : vector<1x128xf32>
      %220 = arith.mulf %218, %219 : vector<1x128xf32>
      %221 = arith.subf %214, %208 : vector<1x128xf32>
      %222 = arith.subf %217, %211 : vector<1x128xf32>
      %223 = arith.mulf %221, %222 : vector<1x128xf32>
      %224 = arith.minimumf %198, %214 : vector<1x128xf32>
      %225 = arith.maximumf %192, %208 : vector<1x128xf32>
      %226 = arith.subf %224, %225 : vector<1x128xf32>
      %cst_69 = arith.constant 0.000000e+00 : f32
      %227 = vector.broadcast %cst_69 : f32 to vector<1x128xf32>
      %228 = arith.maximumf %226, %227 : vector<1x128xf32>
      %229 = arith.minimumf %201, %217 : vector<1x128xf32>
      %230 = arith.maximumf %195, %211 : vector<1x128xf32>
      %231 = arith.subf %229, %230 : vector<1x128xf32>
      %cst_70 = arith.constant 0.000000e+00 : f32
      %232 = vector.broadcast %cst_70 : f32 to vector<1x128xf32>
      %233 = arith.maximumf %231, %232 : vector<1x128xf32>
      %234 = arith.mulf %228, %233 : vector<1x128xf32>
      %235 = arith.addf %220, %223 : vector<1x128xf32>
      %236 = arith.subf %235, %234 : vector<1x128xf32>
      %cst_71 = arith.constant 1.000000e-07 : f32
      %237 = vector.broadcast %cst_71 : f32 to vector<1x128xf32>
      %238 = arith.addf %236, %237 : vector<1x128xf32>
      %239 = tpu.reciprocal %238 {approx = true} : vector<1x128xf32> -> vector<1x128xf32>
      %240 = arith.mulf %234, %239 : vector<1x128xf32>
      %241 = arith.maximumf %198, %214 : vector<1x128xf32>
      %242 = arith.minimumf %192, %208 : vector<1x128xf32>
      %243 = arith.subf %241, %242 : vector<1x128xf32>
      %244 = arith.maximumf %201, %217 : vector<1x128xf32>
      %245 = arith.minimumf %195, %211 : vector<1x128xf32>
      %246 = arith.subf %244, %245 : vector<1x128xf32>
      %247 = arith.mulf %243, %246 : vector<1x128xf32>
      %248 = arith.subf %247, %236 : vector<1x128xf32>
      %cst_72 = arith.constant 1.000000e-07 : f32
      %249 = vector.broadcast %cst_72 : f32 to vector<1x128xf32>
      %250 = arith.addf %247, %249 : vector<1x128xf32>
      %251 = tpu.reciprocal %250 {approx = true} : vector<1x128xf32> -> vector<1x128xf32>
      %252 = arith.mulf %248, %251 : vector<1x128xf32>
      %253 = arith.subf %240, %252 : vector<1x128xf32>
      %254 = vector.extract_strided_slice %169 {offsets = [4, 0], sizes = [4, 128], strides = [1, 1]} : vector<8x128xf32> to vector<4x128xf32>
      %255 = vector.extract_strided_slice %170 {offsets = [4, 0], sizes = [4, 128], strides = [1, 1]} : vector<8x128xf32> to vector<4x128xf32>
      %256 = vector.extract_strided_slice %254 {offsets = [0, 0], sizes = [1, 128], strides = [1, 1]} : vector<4x128xf32> to vector<1x128xf32>
      %257 = vector.extract_strided_slice %254 {offsets = [1, 0], sizes = [1, 128], strides = [1, 1]} : vector<4x128xf32> to vector<1x128xf32>
      %258 = vector.extract_strided_slice %254 {offsets = [2, 0], sizes = [1, 128], strides = [1, 1]} : vector<4x128xf32> to vector<1x128xf32>
      %259 = vector.extract_strided_slice %254 {offsets = [3, 0], sizes = [1, 128], strides = [1, 1]} : vector<4x128xf32> to vector<1x128xf32>
      %cst_73 = arith.constant 5.000000e-01 : f32
      %260 = vector.broadcast %cst_73 : f32 to vector<1x128xf32>
      %261 = arith.mulf %260, %258 : vector<1x128xf32>
      %262 = arith.subf %256, %261 : vector<1x128xf32>
      %cst_74 = arith.constant 5.000000e-01 : f32
      %263 = vector.broadcast %cst_74 : f32 to vector<1x128xf32>
      %264 = arith.mulf %263, %259 : vector<1x128xf32>
      %265 = arith.subf %257, %264 : vector<1x128xf32>
      %cst_75 = arith.constant 5.000000e-01 : f32
      %266 = vector.broadcast %cst_75 : f32 to vector<1x128xf32>
      %267 = arith.mulf %266, %258 : vector<1x128xf32>
      %268 = arith.addf %256, %267 : vector<1x128xf32>
      %cst_76 = arith.constant 5.000000e-01 : f32
      %269 = vector.broadcast %cst_76 : f32 to vector<1x128xf32>
      %270 = arith.mulf %269, %259 : vector<1x128xf32>
      %271 = arith.addf %257, %270 : vector<1x128xf32>
      %272 = vector.extract_strided_slice %255 {offsets = [0, 0], sizes = [1, 128], strides = [1, 1]} : vector<4x128xf32> to vector<1x128xf32>
      %273 = vector.extract_strided_slice %255 {offsets = [1, 0], sizes = [1, 128], strides = [1, 1]} : vector<4x128xf32> to vector<1x128xf32>
      %274 = vector.extract_strided_slice %255 {offsets = [2, 0], sizes = [1, 128], strides = [1, 1]} : vector<4x128xf32> to vector<1x128xf32>
      %275 = vector.extract_strided_slice %255 {offsets = [3, 0], sizes = [1, 128], strides = [1, 1]} : vector<4x128xf32> to vector<1x128xf32>
      %cst_77 = arith.constant 5.000000e-01 : f32
      %276 = vector.broadcast %cst_77 : f32 to vector<1x128xf32>
      %277 = arith.mulf %276, %274 : vector<1x128xf32>
      %278 = arith.subf %272, %277 : vector<1x128xf32>
      %cst_78 = arith.constant 5.000000e-01 : f32
      %279 = vector.broadcast %cst_78 : f32 to vector<1x128xf32>
      %280 = arith.mulf %279, %275 : vector<1x128xf32>
      %281 = arith.subf %273, %280 : vector<1x128xf32>
      %cst_79 = arith.constant 5.000000e-01 : f32
      %282 = vector.broadcast %cst_79 : f32 to vector<1x128xf32>
      %283 = arith.mulf %282, %274 : vector<1x128xf32>
      %284 = arith.addf %272, %283 : vector<1x128xf32>
      %cst_80 = arith.constant 5.000000e-01 : f32
      %285 = vector.broadcast %cst_80 : f32 to vector<1x128xf32>
      %286 = arith.mulf %285, %275 : vector<1x128xf32>
      %287 = arith.addf %273, %286 : vector<1x128xf32>
      %288 = arith.subf %268, %262 : vector<1x128xf32>
      %289 = arith.subf %271, %265 : vector<1x128xf32>
      %290 = arith.mulf %288, %289 : vector<1x128xf32>
      %291 = arith.subf %284, %278 : vector<1x128xf32>
      %292 = arith.subf %287, %281 : vector<1x128xf32>
      %293 = arith.mulf %291, %292 : vector<1x128xf32>
      %294 = arith.minimumf %268, %284 : vector<1x128xf32>
      %295 = arith.maximumf %262, %278 : vector<1x128xf32>
      %296 = arith.subf %294, %295 : vector<1x128xf32>
      %cst_81 = arith.constant 0.000000e+00 : f32
      %297 = vector.broadcast %cst_81 : f32 to vector<1x128xf32>
      %298 = arith.maximumf %296, %297 : vector<1x128xf32>
      %299 = arith.minimumf %271, %287 : vector<1x128xf32>
      %300 = arith.maximumf %265, %281 : vector<1x128xf32>
      %301 = arith.subf %299, %300 : vector<1x128xf32>
      %cst_82 = arith.constant 0.000000e+00 : f32
      %302 = vector.broadcast %cst_82 : f32 to vector<1x128xf32>
      %303 = arith.maximumf %301, %302 : vector<1x128xf32>
      %304 = arith.mulf %298, %303 : vector<1x128xf32>
      %305 = arith.addf %290, %293 : vector<1x128xf32>
      %306 = arith.subf %305, %304 : vector<1x128xf32>
      %cst_83 = arith.constant 1.000000e-07 : f32
      %307 = vector.broadcast %cst_83 : f32 to vector<1x128xf32>
      %308 = arith.addf %306, %307 : vector<1x128xf32>
      %309 = tpu.reciprocal %308 {approx = true} : vector<1x128xf32> -> vector<1x128xf32>
      %310 = arith.mulf %304, %309 : vector<1x128xf32>
      %311 = arith.maximumf %268, %284 : vector<1x128xf32>
      %312 = arith.minimumf %262, %278 : vector<1x128xf32>
      %313 = arith.subf %311, %312 : vector<1x128xf32>
      %314 = arith.maximumf %271, %287 : vector<1x128xf32>
      %315 = arith.minimumf %265, %281 : vector<1x128xf32>
      %316 = arith.subf %314, %315 : vector<1x128xf32>
      %317 = arith.mulf %313, %316 : vector<1x128xf32>
      %318 = arith.subf %317, %306 : vector<1x128xf32>
      %cst_84 = arith.constant 1.000000e-07 : f32
      %319 = vector.broadcast %cst_84 : f32 to vector<1x128xf32>
      %320 = arith.addf %317, %319 : vector<1x128xf32>
      %321 = tpu.reciprocal %320 {approx = true} : vector<1x128xf32> -> vector<1x128xf32>
      %322 = arith.mulf %318, %321 : vector<1x128xf32>
      %323 = arith.subf %310, %322 : vector<1x128xf32>
      %cst_85 = arith.constant 1.000000e+00 : f32
      %324 = vector.broadcast %cst_85 : f32 to vector<1x128xf32>
      %325 = arith.subf %324, %253 : vector<1x128xf32>
      %326 = arith.mulf %325, %175 : vector<1x128xf32>
      %327 = vector.shape_cast %326 : vector<1x128xf32> to vector<1x1x128xf32>
      %cst_86 = arith.constant dense<0.000000e+00> : vector<1xf32>
      %328 = vector.multi_reduction <add>, %327, %cst_86 [1, 2] : vector<1x1x128xf32> to vector<1xf32>
      %329 = vector.shape_cast %328 : vector<1xf32> to vector<1x1x1xf32>
      %330 = vector.extract %329[0, 0, 0] : f32 from vector<1x1x1xf32>
      %cst_87 = arith.constant 1.000000e+00 : f32
      %331 = vector.broadcast %cst_87 : f32 to vector<1x128xf32>
      %332 = arith.subf %331, %323 : vector<1x128xf32>
      %333 = arith.mulf %332, %175 : vector<1x128xf32>
      %334 = vector.shape_cast %333 : vector<1x128xf32> to vector<1x1x128xf32>
      %cst_88 = arith.constant dense<0.000000e+00> : vector<1xf32>
      %335 = vector.multi_reduction <add>, %334, %cst_88 [1, 2] : vector<1x1x128xf32> to vector<1xf32>
      %336 = vector.shape_cast %335 : vector<1xf32> to vector<1x1x1xf32>
      %337 = vector.extract %336[0, 0, 0] : f32 from vector<1x1x1xf32>
      %338 = arith.addf %330, %337 : f32
      %c2_i32 = arith.constant 2 : i32
      %339 = vector.broadcast %c2_i32 : i32 to vector<1x128xi32>
      %340 = arith.cmpi eq, %1, %339 : vector<1x128xi32>
      %cst_89 = arith.constant 0.000000e+00 : f32
      %341 = vector.broadcast %168 : f32 to vector<1x128xf32>
      %342 = vector.broadcast %cst_89 : f32 to vector<1x128xf32>
      %343 = arith.select %340, %341, %342 : vector<1x128xi1>, vector<1x128xf32>
      %c3_i32 = arith.constant 3 : i32
      %344 = vector.broadcast %c3_i32 : i32 to vector<1x128xi32>
      %345 = arith.cmpi eq, %1, %344 : vector<1x128xi32>
      %346 = vector.broadcast %183 : f32 to vector<1x128xf32>
      %347 = arith.select %345, %346, %343 : vector<1x128xi1>, vector<1x128xf32>
      %c4_i32 = arith.constant 4 : i32
      %348 = vector.broadcast %c4_i32 : i32 to vector<1x128xi32>
      %349 = arith.cmpi eq, %1, %348 : vector<1x128xi32>
      %350 = vector.broadcast %338 : f32 to vector<1x128xf32>
      %351 = arith.select %349, %350, %347 : vector<1x128xi1>, vector<1x128xf32>
      %c0_90 = arith.constant 0 : index
      %c0_91 = arith.constant 0 : index
      %352 = vector.load %arg17[%c0_90, %c0_91] : memref<1x128xf32, #tpu.memory_space<vmem>>, vector<1x128xf32>
      tpu.vector_store %arg17[%c0_90, %c0_91], %351 {strides = array<i32>} : memref<1x128xf32, #tpu.memory_space<vmem>>, vector<1x128xf32>,
    } else {
    }
    %c0_1 = arith.constant 0 : index
    %c0_2 = arith.constant 0 : index
    %5 = vector.load %arg3[%c0_1, %c0_2] : memref<8x128xbf16, #tpu.memory_space<vmem>>, vector<8x128xbf16>
    %6 = arith.extf %5 : vector<8x128xbf16> to vector<8x128xf32>
    %c0_3 = arith.constant 0 : index
    %c0_4 = arith.constant 0 : index
    %7 = vector.load %arg4[%c0_3, %c0_4] : memref<8x1xi32, #tpu.memory_space<vmem>>, vector<8x1xi32>
    %c8_i32 = arith.constant 8 : i32
    %8 = arith.muli %arg0, %c8_i32 : i32
    %9 = tpu.iota {dimensions = array<i32: 0>} : vector<8x1xi32>
    %10 = vector.broadcast %8 : i32 to vector<8x1xi32>
    %11 = arith.addi %10, %9 : vector<8x1xi32>
    %12 = vector.broadcast %0 : i32 to vector<8x1xi32>
    %13 = arith.cmpi slt, %11, %12 : vector<8x1xi32>
    %14 = arith.extui %13 : vector<8x1xi1> to vector<8x1xi32>
    %15 = arith.sitofp %14 : vector<8x1xi32> to vector<8x1xf32>
    %16 = tpu.iota {dimensions = array<i32: 1>} : vector<8x128xi32>
    %17 = vector.broadcast %7 : vector<8x1xi32> to vector<8x128xi32>
    %18 = arith.cmpi eq, %16, %17 : vector<8x128xi32>
    %cst = arith.constant dense<0xFF800000> : vector<8xf32>
    %19 = vector.multi_reduction <maximumf>, %6, %cst [1] : vector<8x128xf32> to vector<8xf32>
    %20 = vector.shape_cast %19 : vector<8xf32> to vector<8x1xf32>
    %21 = vector.broadcast %20 : vector<8x1xf32> to vector<8x128xf32>
    %22 = arith.subf %6, %21 : vector<8x128xf32>
    %23 = math.exp %22 : vector<8x128xf32>
    %cst_5 = arith.constant dense<0.000000e+00> : vector<8xf32>
    %24 = vector.multi_reduction <add>, %23, %cst_5 [1] : vector<8x128xf32> to vector<8xf32>
    %25 = vector.shape_cast %24 : vector<8xf32> to vector<8x1xf32>
    %26 = math.log %25 : vector<8x1xf32>
    %27 = arith.addf %20, %26 : vector<8x1xf32>
    %cst_6 = arith.constant 0.000000e+00 : f32
    %28 = vector.broadcast %cst_6 : f32 to vector<8x128xf32>
    %29 = arith.select %18, %6, %28 : vector<8x128xi1>, vector<8x128xf32>
    %cst_7 = arith.constant dense<0.000000e+00> : vector<8xf32>
    %30 = vector.multi_reduction <add>, %29, %cst_7 [1] : vector<8x128xf32> to vector<8xf32>
    %31 = vector.shape_cast %30 : vector<8xf32> to vector<8x1xf32>
    %32 = arith.subf %27, %31 : vector<8x1xf32>
    %33 = arith.mulf %32, %15 : vector<8x1xf32>
    %34 = vector.shape_cast %33 : vector<8x1xf32> to vector<1x8x1xf32>
    %cst_8 = arith.constant dense<0.000000e+00> : vector<1xf32>
    %35 = vector.multi_reduction <add>, %34, %cst_8 [1, 2] : vector<1x8x1xf32> to vector<1xf32>
    %36 = vector.shape_cast %35 : vector<1xf32> to vector<1x1x1xf32>
    %37 = vector.extract %36[0, 0, 0] : f32 from vector<1x1x1xf32>
    %38 = arith.cmpf oge, %31, %20 : vector<8x1xf32>
    %39 = arith.extui %38 : vector<8x1xi1> to vector<8x1xi32>
    %40 = arith.sitofp %39 : vector<8x1xi32> to vector<8x1xf32>
    %41 = arith.mulf %40, %15 : vector<8x1xf32>
    %42 = vector.shape_cast %41 : vector<8x1xf32> to vector<1x8x1xf32>
    %cst_9 = arith.constant dense<0.000000e+00> : vector<1xf32>
    %43 = vector.multi_reduction <add>, %42, %cst_9 [1, 2] : vector<1x8x1xf32> to vector<1xf32>
    %44 = vector.shape_cast %43 : vector<1xf32> to vector<1x1x1xf32>
    %45 = vector.extract %44[0, 0, 0] : f32 from vector<1x1x1xf32>
    %c0_10 = arith.constant 0 : index
    %c0_11 = arith.constant 0 : index
    %46 = vector.load %arg5[%c0_10, %c0_11] : memref<8x1xi32, #tpu.memory_space<vmem>>, vector<8x1xi32>
    %47 = tpu.iota {dimensions = array<i32: 1>} : vector<8x2xi32>
    %48 = vector.broadcast %46 : vector<8x1xi32> to vector<8x2xi32>
    %49 = arith.cmpi eq, %47, %48 : vector<8x2xi32>
    %50 = arith.extui %49 : vector<8x2xi1> to vector<8x2xi32>
    %51 = arith.sitofp %50 : vector<8x2xi32> to vector<8x2xf32>
    %52 = arith.truncf %51 : vector<8x2xf32> to vector<8x2xbf16>
    %c0_12 = arith.constant 0 : index
    %c0_13 = arith.constant 0 : index
    %53 = vector.load %arg11[%c0_12, %c0_13] : memref<2x256xbf16, #tpu.memory_space<vmem>>, vector<2x256xbf16>
    %cst_14 = arith.constant dense<0.000000e+00> : vector<8x256xf32>
    %54 = tpu.matmul %52, %53, %cst_14 {dimension_numbers = #tpu.dot_dimension_numbers<[1], [0], [0], [1], [0, 0, 1, 1], [], []>} : vector<8x2xbf16>, vector<2x256xbf16>, vector<8x256xf32> -> vector<8x256xf32>
    %c0_15 = arith.constant 0 : index
    %c0_16 = arith.constant 0 : index
    %55 = vector.load %arg12[%c0_15, %c0_16] : memref<2x256xbf16, #tpu.memory_space<vmem>>, vector<2x256xbf16>
    %cst_17 = arith.constant dense<0.000000e+00> : vector<8x256xf32>
    %56 = tpu.matmul %52, %55, %cst_17 {dimension_numbers = #tpu.dot_dimension_numbers<[1], [0], [0], [1], [0, 0, 1, 1], [], []>} : vector<8x2xbf16>, vector<2x256xbf16>, vector<8x256xf32> -> vector<8x256xf32>
    %c0_18 = arith.constant 0 : index
    %c0_19 = arith.constant 0 : index
    %57 = vector.load %arg13[%c0_18, %c0_19] : memref<2x256xbf16, #tpu.memory_space<vmem>>, vector<2x256xbf16>
    %cst_20 = arith.constant dense<0.000000e+00> : vector<8x256xf32>
    %58 = tpu.matmul %52, %57, %cst_20 {dimension_numbers = #tpu.dot_dimension_numbers<[1], [0], [0], [1], [0, 0, 1, 1], [], []>} : vector<8x2xbf16>, vector<2x256xbf16>, vector<8x256xf32> -> vector<8x256xf32>
    %c0_21 = arith.constant 0 : index
    %c0_22 = arith.constant 0 : index
    %59 = vector.load %arg14[%c0_21, %c0_22] : memref<8x256xi8, #tpu.memory_space<vmem>>, vector<8x256xi8>
    %60 = arith.sitofp %59 : vector<8x256xi8> to vector<8x256xf32>
    %c0_23 = arith.constant 0 : index
    %c0_24 = arith.constant 0 : index
    %61 = vector.load %arg15[%c0_23, %c0_24] : memref<8x256xi8, #tpu.memory_space<vmem>>, vector<8x256xi8>
    %62 = arith.sitofp %61 : vector<8x256xi8> to vector<8x256xf32>
    %63 = arith.maximumf %60, %62 : vector<8x256xf32>
    %cst_25 = arith.constant 0.000000e+00 : f32
    %64 = vector.broadcast %cst_25 : f32 to vector<8x256xf32>
    %65 = arith.maximumf %54, %64 : vector<8x256xf32>
    %66 = arith.mulf %54, %60 : vector<8x256xf32>
    %67 = arith.subf %65, %66 : vector<8x256xf32>
    %68 = math.absf %54 : vector<8x256xf32>
    %cst_26 = arith.constant 0.000000e+00 : f32
    %69 = vector.broadcast %cst_26 : f32 to vector<8x256xf32>
    %70 = arith.subf %69, %68 : vector<8x256xf32>
    %71 = math.exp %70 : vector<8x256xf32>
    %72 = math.log1p %71 : vector<8x256xf32>
    %73 = arith.addf %67, %72 : vector<8x256xf32>
    %74 = vector.broadcast %15 : vector<8x1xf32> to vector<8x256xf32>
    %75 = arith.mulf %73, %74 : vector<8x256xf32>
    %76 = vector.shape_cast %75 : vector<8x256xf32> to vector<1x8x256xf32>
    %cst_27 = arith.constant dense<0.000000e+00> : vector<1xf32>
    %77 = vector.multi_reduction <add>, %76, %cst_27 [1, 2] : vector<1x8x256xf32> to vector<1xf32>
    %78 = vector.shape_cast %77 : vector<1xf32> to vector<1x1x1xf32>
    %79 = vector.extract %78[0, 0, 0] : f32 from vector<1x1x1xf32>
    %cst_28 = arith.constant 0.000000e+00 : f32
    %80 = vector.broadcast %cst_28 : f32 to vector<8x256xf32>
    %81 = arith.maximumf %56, %80 : vector<8x256xf32>
    %82 = arith.mulf %56, %62 : vector<8x256xf32>
    %83 = arith.subf %81, %82 : vector<8x256xf32>
    %84 = math.absf %56 : vector<8x256xf32>
    %cst_29 = arith.constant 0.000000e+00 : f32
    %85 = vector.broadcast %cst_29 : f32 to vector<8x256xf32>
    %86 = arith.subf %85, %84 : vector<8x256xf32>
    %87 = math.exp %86 : vector<8x256xf32>
    %88 = math.log1p %87 : vector<8x256xf32>
    %89 = arith.addf %83, %88 : vector<8x256xf32>
    %90 = vector.broadcast %15 : vector<8x1xf32> to vector<8x256xf32>
    %91 = arith.mulf %89, %90 : vector<8x256xf32>
    %92 = vector.shape_cast %91 : vector<8x256xf32> to vector<1x8x256xf32>
    %cst_30 = arith.constant dense<0.000000e+00> : vector<1xf32>
    %93 = vector.multi_reduction <add>, %92, %cst_30 [1, 2] : vector<1x8x256xf32> to vector<1xf32>
    %94 = vector.shape_cast %93 : vector<1xf32> to vector<1x1x1xf32>
    %95 = vector.extract %94[0, 0, 0] : f32 from vector<1x1x1xf32>
    %cst_31 = arith.constant 0.000000e+00 : f32
    %96 = vector.broadcast %cst_31 : f32 to vector<8x256xf32>
    %97 = arith.maximumf %58, %96 : vector<8x256xf32>
    %98 = arith.mulf %58, %63 : vector<8x256xf32>
    %99 = arith.subf %97, %98 : vector<8x256xf32>
    %100 = math.absf %58 : vector<8x256xf32>
    %cst_32 = arith.constant 0.000000e+00 : f32
    %101 = vector.broadcast %cst_32 : f32 to vector<8x256xf32>
    %102 = arith.subf %101, %100 : vector<8x256xf32>
    %103 = math.exp %102 : vector<8x256xf32>
    %104 = math.log1p %103 : vector<8x256xf32>
    %105 = arith.addf %99, %104 : vector<8x256xf32>
    %106 = vector.broadcast %15 : vector<8x1xf32> to vector<8x256xf32>
    %107 = arith.mulf %105, %106 : vector<8x256xf32>
    %108 = vector.shape_cast %107 : vector<8x256xf32> to vector<1x8x256xf32>
    %cst_33 = arith.constant dense<0.000000e+00> : vector<1xf32>
    %109 = vector.multi_reduction <add>, %108, %cst_33 [1, 2] : vector<1x8x256xf32> to vector<1xf32>
    %110 = vector.shape_cast %109 : vector<1xf32> to vector<1x1x1xf32>
    %111 = vector.extract %110[0, 0, 0] : f32 from vector<1x1x1xf32>
    %c0_i32_34 = arith.constant 0 : i32
    %112 = vector.broadcast %c0_i32_34 : i32 to vector<1x128xi32>
    %113 = arith.cmpi eq, %1, %112 : vector<1x128xi32>
    %cst_35 = arith.constant 0.000000e+00 : f32
    %114 = vector.broadcast %37 : f32 to vector<1x128xf32>
    %115 = vector.broadcast %cst_35 : f32 to vector<1x128xf32>
    %116 = arith.select %113, %114, %115 : vector<1x128xi1>, vector<1x128xf32>
    %c1_i32 = arith.constant 1 : i32
    %117 = vector.broadcast %c1_i32 : i32 to vector<1x128xi32>
    %118 = arith.cmpi eq, %1, %117 : vector<1x128xi32>
    %119 = vector.broadcast %45 : f32 to vector<1x128xf32>
    %120 = arith.select %118, %119, %116 : vector<1x128xi1>, vector<1x128xf32>
    %c5_i32 = arith.constant 5 : i32
    %121 = vector.broadcast %c5_i32 : i32 to vector<1x128xi32>
    %122 = arith.cmpi eq, %1, %121 : vector<1x128xi32>
    %123 = vector.broadcast %79 : f32 to vector<1x128xf32>
    %124 = arith.select %122, %123, %120 : vector<1x128xi1>, vector<1x128xf32>
    %c6_i32 = arith.constant 6 : i32
    %125 = vector.broadcast %c6_i32 : i32 to vector<1x128xi32>
    %126 = arith.cmpi eq, %1, %125 : vector<1x128xi32>
    %127 = vector.broadcast %95 : f32 to vector<1x128xf32>
    %128 = arith.select %126, %127, %124 : vector<1x128xi1>, vector<1x128xf32>
    %c7_i32 = arith.constant 7 : i32
    %129 = vector.broadcast %c7_i32 : i32 to vector<1x128xi32>
    %130 = arith.cmpi eq, %1, %129 : vector<1x128xi32>
    %131 = vector.broadcast %111 : f32 to vector<1x128xf32>
    %132 = arith.select %130, %131, %128 : vector<1x128xi1>, vector<1x128xf32>
    %c0_36 = arith.constant 0 : index
    %c0_37 = arith.constant 0 : index
    %133 = vector.load %arg17[%c0_36, %c0_37] : memref<1x128xf32, #tpu.memory_space<vmem>>, vector<1x128xf32>
    %134 = arith.addf %133, %132 : vector<1x128xf32>
    %c0_38 = arith.constant 0 : index
    %c0_39 = arith.constant 0 : index
    %135 = vector.load %arg17[%c0_38, %c0_39] : memref<1x128xf32, #tpu.memory_space<vmem>>, vector<1x128xf32>
    tpu.vector_store %arg17[%c0_38, %c0_39], %134 {strides = array<i32>} : memref<1x128xf32, #tpu.memory_space<vmem>>, vector<1x128xf32>,
    %c0_i32_40 = arith.constant 0 : i32
    %136 = arith.cmpi eq, %arg0, %c0_i32_40 : i32
    %137 = arith.extui %136 : i1 to i32
    %c0_i32_41 = arith.constant 0 : i32
    %138 = arith.cmpi ne, %137, %c0_i32_41 : i32
    scf.if %138 {
      %c0_42 = arith.constant 0 : index
      %139 = memref.load %arg2[%c0_42] : memref<4xf32, #tpu.memory_space<smem>>
      %c1 = arith.constant 1 : index
      %140 = memref.load %arg2[%c1] : memref<4xf32, #tpu.memory_space<smem>>
      %c2 = arith.constant 2 : index
      %141 = memref.load %arg2[%c2] : memref<4xf32, #tpu.memory_space<smem>>
      %c3 = arith.constant 3 : index
      %142 = memref.load %arg2[%c3] : memref<4xf32, #tpu.memory_space<smem>>
      %c0_43 = arith.constant 0 : index
      %c0_44 = arith.constant 0 : index
      %143 = vector.load %arg17[%c0_43, %c0_44] : memref<1x128xf32, #tpu.memory_space<vmem>>, vector<1x128xf32>
      %c1_i32_45 = arith.constant 1 : i32
      %144 = vector.broadcast %c1_i32_45 : i32 to vector<1x128xi32>
      %145 = arith.cmpi sle, %1, %144 : vector<1x128xi32>
      %146 = vector.broadcast %139 : f32 to vector<1x128xf32>
      %147 = vector.broadcast %142 : f32 to vector<1x128xf32>
      %148 = arith.select %145, %146, %147 : vector<1x128xi1>, vector<1x128xf32>
      %c2_i32 = arith.constant 2 : i32
      %149 = vector.broadcast %c2_i32 : i32 to vector<1x128xi32>
      %150 = arith.cmpi eq, %1, %149 : vector<1x128xi32>
      %151 = vector.broadcast %141 : f32 to vector<1x128xf32>
      %152 = arith.select %150, %151, %148 : vector<1x128xi1>, vector<1x128xf32>
      %c3_i32 = arith.constant 3 : i32
      %153 = vector.broadcast %c3_i32 : i32 to vector<1x128xi32>
      %154 = arith.cmpi eq, %1, %153 : vector<1x128xi32>
      %c4_i32 = arith.constant 4 : i32
      %155 = vector.broadcast %c4_i32 : i32 to vector<1x128xi32>
      %156 = arith.cmpi eq, %1, %155 : vector<1x128xi32>
      %157 = arith.ori %154, %156 : vector<1x128xi1>
      %158 = vector.broadcast %140 : f32 to vector<1x128xf32>
      %159 = arith.select %157, %158, %152 : vector<1x128xi1>, vector<1x128xf32>
      %160 = arith.mulf %143, %159 : vector<1x128xf32>
      %c1_i32_46 = arith.constant 1 : i32
      %161 = vector.broadcast %c1_i32_46 : i32 to vector<1x128xi32>
      %162 = arith.cmpi eq, %1, %161 : vector<1x128xi32>
      %cst_47 = arith.constant 1.000000e+02 : f32
      %163 = vector.broadcast %cst_47 : f32 to vector<1x128xf32>
      %164 = arith.mulf %163, %160 : vector<1x128xf32>
      %cst_48 = arith.constant 1.000000e+02 : f32
      %165 = vector.broadcast %cst_48 : f32 to vector<1x128xf32>
      %166 = arith.subf %165, %164 : vector<1x128xf32>
      %167 = arith.select %162, %166, %160 : vector<1x128xi1>, vector<1x128xf32>
      %c0_49 = arith.constant 0 : index
      %c0_50 = arith.constant 0 : index
      %168 = vector.load %arg16[%c0_49, %c0_50] : memref<1x128xf32, #tpu.memory_space<vmem>>, vector<1x128xf32>
      tpu.vector_store %arg16[%c0_49, %c0_50], %167 {strides = array<i32>} : memref<1x128xf32, #tpu.memory_space<vmem>>, vector<1x128xf32>,
    } else {
    }
    return
  }
  func.func @transform_0(%arg0: i32) -> i32 {
    %c0_i32 = arith.constant 0 : i32
    %c0_i32_0 = arith.constant 0 : i32
    return %c0_i32 : i32
  }
  func.func @transform_1(%arg0: i32) -> i32 {
    %c0_i32 = arith.constant 0 : i32
    %c0_i32_0 = arith.constant 0 : i32
    return %c0_i32 : i32
  }
  func.func @transform_2(%arg0: i32) -> (i32, i32) {
    %c0_i32 = arith.constant 0 : i32
    %c0_i32_0 = arith.constant 0 : i32
    return %arg0, %c0_i32 : i32, i32
  }
  func.func @transform_3(%arg0: i32) -> (i32, i32) {
    %c0_i32 = arith.constant 0 : i32
    %c0_i32_0 = arith.constant 0 : i32
    return %arg0, %c0_i32 : i32, i32
  }
  func.func @transform_4(%arg0: i32) -> (i32, i32) {
    %c0_i32 = arith.constant 0 : i32
    %c0_i32_0 = arith.constant 0 : i32
    return %arg0, %c0_i32 : i32, i32
  }
  func.func @transform_5(%arg0: i32) -> (i32, i32) {
    %c0_i32 = arith.constant 0 : i32
    %c0_i32_0 = arith.constant 0 : i32
    %c0_i32_1 = arith.constant 0 : i32
    return %c0_i32, %c0_i32_0 : i32, i32
  }
  func.func @transform_6(%arg0: i32) -> (i32, i32) {
    %c0_i32 = arith.constant 0 : i32
    %c0_i32_0 = arith.constant 0 : i32
    %c0_i32_1 = arith.constant 0 : i32
    return %c0_i32, %c0_i32_0 : i32, i32
  }
  func.func @transform_7(%arg0: i32) -> (i32, i32) {
    %c0_i32 = arith.constant 0 : i32
    %c0_i32_0 = arith.constant 0 : i32
    %c0_i32_1 = arith.constant 0 : i32
    return %c0_i32, %c0_i32_0 : i32, i32
  }
  func.func @transform_8(%arg0: i32) -> (i32, i32) {
    %c0_i32 = arith.constant 0 : i32
    %c0_i32_0 = arith.constant 0 : i32
    %c0_i32_1 = arith.constant 0 : i32
    return %c0_i32, %c0_i32_0 : i32, i32
  }
  func.func @transform_9(%arg0: i32) -> (i32, i32) {
    %c0_i32 = arith.constant 0 : i32
    %c0_i32_0 = arith.constant 0 : i32
    %c0_i32_1 = arith.constant 0 : i32
    return %c0_i32, %c0_i32_0 : i32, i32
  }
  func.func @transform_10(%arg0: i32) -> (i32, i32) {
    %c0_i32 = arith.constant 0 : i32
    %c0_i32_0 = arith.constant 0 : i32
    %c0_i32_1 = arith.constant 0 : i32
    return %c0_i32, %c0_i32_0 : i32, i32
  }
  func.func @transform_11(%arg0: i32) -> (i32, i32) {
    %c0_i32 = arith.constant 0 : i32
    %c0_i32_0 = arith.constant 0 : i32
    %c0_i32_1 = arith.constant 0 : i32
    return %c0_i32, %c0_i32_0 : i32, i32
  }
  func.func @transform_12(%arg0: i32) -> (i32, i32) {
    %c0_i32 = arith.constant 0 : i32
    %c0_i32_0 = arith.constant 0 : i32
    %c0_i32_1 = arith.constant 0 : i32
    return %c0_i32, %c0_i32_0 : i32, i32
  }
  func.func @transform_13(%arg0: i32) -> (i32, i32) {
    %c0_i32 = arith.constant 0 : i32
    %c0_i32_0 = arith.constant 0 : i32
    return %arg0, %c0_i32 : i32, i32
  }
  func.func @transform_14(%arg0: i32) -> (i32, i32) {
    %c0_i32 = arith.constant 0 : i32
    %c0_i32_0 = arith.constant 0 : i32
    return %arg0, %c0_i32 : i32, i32
  }
  func.func @transform_15(%arg0: i32) -> (i32, i32) {
    %c0_i32 = arith.constant 0 : i32
    %c0_i32_0 = arith.constant 0 : i32
    %c0_i32_1 = arith.constant 0 : i32
    return %c0_i32, %c0_i32_0 : i32, i32
  }
}

</mosaic_0001>

<bundles_post_ra>
// kernel: _fused_losses_device.1
= control target key start
LH: loop header
LB: loop body
LE: loop exit
PB: predicated region body
PF: predicated region fallthrough
CT: control target
= control target key end

     0   :  { %21 = vsyncpa [#allocation6], 0  ;;  %s1158_s0 = inlined_call_operand.<no memory space> [shape: s32[1], index: 0, kind: input, shape index: {}]   ;;  %s1159_s1 = inlined_call_operand.vmem [shape: f32[4], index: 1, kind: input, shape index: {}]   ;;  %s1160_s2 = inlined_call_operand.vmem [shape: bf16[8,128], index: 2, kind: input, shape index: {}]   ;;  %s1161_s3 = inlined_call_operand.vmem [shape: s32[8,1], index: 3, kind: input, shape index: {}]   ;;  %s1162_s4 = inlined_call_operand.vmem [shape: s32[8,1], index: 4, kind: input, shape index: {}]   ;;  %s1163_s5 = inlined_call_operand.vmem [shape: f32[1,128], index: 5, kind: input, shape index: {}]   ;;  %s1164_s6 = inlined_call_operand.vmem [shape: f32[1,128], index: 6, kind: input, shape index: {}]   ;;  %s1165_s7 = inlined_call_operand.vmem [shape: f32[1,128], index: 7, kind: input, shape index: {}]   ;;  %s1166_s8 = inlined_call_operand.vmem [shape: f32[8,128], index: 8, kind: input, shape index: {}]   ;;  %s1167_s9 = inlined_call_operand.vmem [shape: f32[8,128], index: 9, kind: input, shape index: {}]   ;;  %s1168_s10 = inlined_call_operand.vmem [shape: bf16[2,256], index: 10, kind: input, shape index: {}]   ;;  %s1169_s11 = inlined_call_operand.vmem [shape: bf16[2,256], index: 11, kind: input, shape index: {}]   ;;  %s1170_s12 = inlined_call_operand.vmem [shape: bf16[2,256], index: 12, kind: input, shape index: {}]   ;;  %s1171_s13 = inlined_call_operand.vmem [shape: s8[8,256], index: 13, kind: input, shape index: {}]   ;;  %s1172_s14 = inlined_call_operand.vmem [shape: s8[8,256], index: 14, kind: input, shape index: {}]   ;;  %s1173_s15 = inlined_call_operand.hbm [shape: f32[1,128], index: 15, kind: output, shape index: {}]  }
   0x1   :  { %22 = vsyncpa [#allocation5], 0  ;;  %s31_s20 = sshll.u32 %s1159_s1, 4  ;;  %s32_s20 = int_to_ptr.vmem [resolvable:$true] %s31_s20 }
   0x2   :  { %s780_s21 = scalar_lea.vmem %s32_s20, 16  ;;  %p785_p1 = scmp.lt.s32.totalorder %s32_s20, %s32_s20 }
   0x3   :  { %p781_p0 = scmp.ne.s32.totalorder %s32_s20, %s780_s21  ;;  %p786_p2 = scmp.lt.s32.totalorder %s780_s21, %s780_s21 }
   0x5   :  { %p787_p3 = por %p786_p2, %p785_p1 }
   0x7   :  { %p788_p4 = pnand %p787_p3, %p781_p0 }
   0x9   :  { %791 = shalt.err (!%p788_p4)
}
   0xa   :  { %s818_s22 = smov [#allocation4]  }
   0xb   :  { %34 = dma.vmem_to_smem %s32_s20, 16, %s818_s22, [#allocation6]  }
   0xc   :  { %814 = dma.done.wait [#allocation6], 16  }
   0xd   :  { %815 = vsyncadd [#allocation6], 4294967280 }
   0xe   :  { %64 = sfence }
   0xf   :  { %v269_v0 = vld [vmem:[%s1162_s4] sm:$0xff]  ;;  %v67_v2 = vlaneseq  ;;  %v819_v3 = vmov 0   ;;  %v820_v6 = vmov 1966171168   ;;  %vm101_vm0 = vcmask 1040384   ;;  %s666_s28 = sld [smem:[#allocation4]] }
  0x10   :  { %v215_v1 = vld [vmem:[%s1161_s3] sm:$0xff]  ;;  %743 = vset.pattern.permute.xlu1 %v819_v3  ;;  %742 = vset.pattern.permute.xlu0 %v819_v3  ;;  %v288_v7 = vunpack.c.l.s4 %v820_v6  ;;  %v114_v25 = vstv %s1158_s0  ;;  %v821_v40 = vmov 0.0   ;;  %vm301_vm4 = vcmask 15360   ;;  %s718_s3 = sld [smem:[#allocation4 + $0x3]]  ;;  %s717_s29 = sld [smem:[#allocation4 + $0x2]] }
  0x11   :  { %271 = vperm.xlu0 %742, %v269_v0   ;;  %226 = vperm.xlu1 %743, %v215_v1   ;;  %v707_v4 = vld.sshfl [vmem:[%s1168_s10] sm:$0x11 pattern:$0x75316420]  ;;  %v218_v5 = vshrl.u32 %v67_v2, 7  ;;  %v959_v32 = vand.u32 127, %v67_v2 }
  0x12   :  { %v710_v8 = vld.sshfl [vmem:[%s1169_s11] sm:$0x11 pattern:$0x75316420]  ;;  %344 = vmatprep.mubr.bf16.mxu0 %v819_v3  ;;  %415 = vmatprep.mubr.bf16.mxu1 %v819_v3  ;;  %v286_v10 = vcombine.high %v707_v4, %v707_v4  ;;  %v289_v11 = vunpack.c.0.s8 %v288_v7  ;;  %vm244_vm8 = vcmask 7168   ;;  %s716_s10 = sld [smem:[#allocation4 + $0x1]] }
  0x13   :  { %v713_v9 = vld.sshfl [vmem:[%s1170_s12] sm:$0x11 pattern:$0x75316420]  ;;  %v362_v12 = vcombine.high %v710_v8, %v710_v8  ;;  %vm943_vm1 = vcmp.lt.s32.totalorder %v218_v5, %v114_v25  ;;  %vm115_vm5 = vcmp.lt.s32.totalorder %v959_v32, %v114_v25  ;;  %vm206_vm15 = vcmp.eq.s32.totalorder %v959_v32, 3  ;;  %s822_s18 = smov [#allocation7]  }
  0x14   :  { %v433_v13 = vcombine.high %v713_v9, %v713_v9  ;;  %v292_v14 = vsub.s32 %v289_v11, %v218_v5  ;;  %v213_v23 = vld [vmem:[%s1160_s2] sm:$0xf]  ;;  %s694_s19 = sshll.u32 %s822_s18, 4  ;;  %s695_s19 = int_to_ptr.vmem [resolvable:$true] %s694_s19 }
  0x15   :  { %v933_v24 = vunpack.c.l.bf16 %v213_v23  ;;  %v950_v27 = vld [vmem:[%s1166_s8] sm:$0xff]  ;;  %s792_s2 = scalar_lea.vmem %s695_s19, 16  ;;  %s796_s20 = scalar_lea.vmem %s695_s19, 32 }
  0x16   :  { %v300_v15 = vrot.slane %v286_v10, %v292_v14  ;;  %v293_v16 = vrot.slane %v707_v4, %v292_v14  ;;  %v376_v17 = vrot.slane %v362_v12, %v292_v14  ;;  %v369_v18 = vrot.slane %v710_v8, %v292_v14  ;;  %v955_v28 = vld [vmem:[%s1167_s9] sm:$0xff]  ;;  %p793_p5 = scmp.ne.s32.totalorder %s695_s19, %s792_s2  ;;  %p797_p6 = scmp.lt.s32.totalorder %s695_s19, %s695_s19 }
  0x17   :  { %v447_v19 = vrot.slane %v433_v13, %v292_v14  ;;  %v440_v20 = vrot.slane %v713_v9, %v292_v14  ;;  %v130_v29 = vmul.f32 0.5, %v950_v27  ;;  %v136_v30 = vmul.f32 0.5, %v955_v28  ;;  %v73_v2 = vld [vmem:[%s1163_s5] sm:$0x1]  ;;  %p798_p7 = scmp.lt.s32.totalorder %s796_s20, %s792_s2 }
  0x18   :  { %708 = vmatprep.subr.msk.bf16.mxu0 %vm101_vm0, %v300_v15  ;;  %v307_v21 = vsel %vm101_vm0, %v293_v16, 0  ;;  %711 = vmatprep.subr.msk.bf16.mxu1 %vm101_vm0, %v376_v17  ;;  %v378_v22 = vsel %vm101_vm0, %v369_v18, 0  ;;  %v118_v15 = vsub.f32 %v950_v27, %v955_v28  ;;  %v703_v17 = vsel %vm115_vm5, 1.0, %v821_v40 }
  0x19   :  { %313 = vmatpush1.bf16.msra.mxu0 %v307_v21  ;;  %384 = vmatpush1.bf16.msra.mxu1 %v378_v22  ;;  %v132_v31 = vrot.slane %v130_v29, 2  ;;  %v138_v33 = vrot.slane %v136_v30, 2  ;;  %v449_v44 = vsel %vm101_vm0, %v440_v20, 0  ;;  %vm648_vm5 = vcmp.eq.s32.totalorder %v959_v32, 1  ;;  %p799_p8 = por %p798_p7, %p797_p6 }
  0x1a   :  { %714 = vmatprep.subr.msk.bf16.mxu0 %vm101_vm0, %v447_v19  ;;  %v119_v19 = vand.u32 2147483647, %v118_v15 }
  0x1b   :  { %v134_v36 = vsub.f32 %v950_v27, %v132_v31  ;;  %v135_v37 = vadd.f32 %v132_v31, %v950_v27  ;;  %v140_v38 = vsub.f32 %v955_v28, %v138_v33  ;;  %v141_v39 = vadd.f32 %v138_v33, %v955_v28  ;;  %p800_p9 = pnand %p799_p8, %p793_p5 }
  0x1c   :  { %v120_v23 = vmul.f32 %v703_v17, %v119_v19 }
  0x1d   :  { %v152_v45 = vmin.f32 %v135_v37, %v141_v39  ;;  %v153_v46 = vmax.f32 %v134_v36, %v140_v38  ;;  %v142_v47 = vsub.f32 %v135_v37, %v134_v36  ;;  %v147_v48 = vsub.f32 %v141_v39, %v140_v38 }
  0x1e   :  { %v165_v50 = vmax.f32 %v135_v37, %v141_v39  ;;  %v166_v51 = vmin.f32 %v134_v36, %v140_v38  ;;  %v74_v39 = vld [vmem:[%s1164_s6] sm:$0x1] }
  0x1f   :  { %v154_v49 = vsub.f32 %v152_v45, %v153_v46  ;;  %v144_v52 = vrot.slane %v142_v47, 1  ;;  %v149_v53 = vrot.slane %v147_v48, 1  ;;  %v75_v46 = vld [vmem:[%s1165_s7] sm:$0x1] }
  0x20   :  { %v167_v55 = vsub.f32 %v165_v50, %v166_v51 }
  0x21   :  { %v155_v54 = vmax.f32 %v154_v49, 0.0  ;;  %v146_v56 = vmul.f32 %v144_v52, %v142_v47  ;;  %v151_v57 = vmul.f32 %v149_v53, %v147_v48  ;;  %v95_v47 = vsub.f32 0.0, %v75_v46 }
  0x22   :  { %v169_v59 = vrot.slane %v167_v55, 1  ;;  %v998_v52 = vsel %vm943_vm1, 1.0, %v821_v40 }
  0x23   :  { %v157_v58 = vrot.slane %v155_v54, 1  ;;  %v160_v61 = vadd.f32 %v151_v57, %v146_v56 }
  0x24   :  { %v171_v62 = vmul.f32 %v169_v59, %v167_v55 }
  0x25   :  { %v159_v60 = vmul.f32 %v157_v58, %v155_v54 }
  0x26   :  { %v173_v0 = vadd.f32 1e-07, %v171_v62 }
  0x27   :  { %v161_v63 = vsub.f32 %v160_v61, %v159_v60 }
  0x28   :  { %744 = vrcp.f32 %v173_v0  ;;  %v495_v0 = vld [vmem:[%s1171_s13] sm:$0xf] }
  0x29   :  { %v162_v1 = vadd.f32 1e-07, %v161_v63  ;;  %v172_v5 = vsub.f32 %v171_v62, %v161_v63  ;;  %v496_v15 = vunpack.c.0.s8 %v495_v0 }
  0x2b   :  { %746 = vrcp.f32 %v162_v1 }
  0x30   :  { %229 = vmax.xlane.f32.xlu0 %v933_v24 }
  0x32   :  { %v745_v4 = vpop.eup %744 }
  0x33   :  { %v175_v12 = vmul.f32 %v745_v4, %v172_v5 }
  0x35   :  { %v747_v6 = vpop.eup %746 }
  0x36   :  { %v164_v11 = vmul.f32 %v747_v6, %v159_v60 }
  0x38   :  { %v176_v14 = vsub.f32 %v164_v11, %v175_v12 }
  0x3a   :  { %v177_v16 = vsub.f32 1.0, %v176_v14 }
  0x3c   :  { %v178_v20 = vmul.f32 %v703_v17, %v177_v16 }
  0x3e   :  { %v179_v51 = vsel %vm101_vm0, %v178_v20, 0.0 }
  0x90   :  { %v272_v34 = vpop.permute.xlu0 %271  ;;  %v227_v35 = vpop.permute.xlu1 %226 }
  0x91   :  { %vm273_vm2 = vcmp.eq.s32.totalorder %v959_v32, %v272_v34  ;;  %vm228_vm3 = vcmp.eq.s32.totalorder %v959_v32, %v227_v35  ;;  %v76_v34 = vmax.f32 %v73_v2, 0.0 }
  0x92   :  { %v706_v41 = vsel %vm273_vm2, 1.0, %v821_v40  ;;  %v239_v42 = vsel %vm228_vm3, %v933_v24, 0.0  ;;  %vm203_vm2 = vcmp.eq.s32.totalorder %v959_v32, 2  ;;  %vm671_vm3 = vcmp.le.s32.totalorder %v959_v32, 1 }
  0x93   :  { %v276_v43 = vpack.c.bf16 %v706_v41, %v706_v41  ;;  %240 = vadd.xlane.f32.xlu0 %v239_v42 }
  0x95   :  { %709 = vmatmul.mubr.msk.bf16.vlgmr.msra.gmra.mrb[0].mxu0 %vm301_vm4, %v276_v43  ;;  %712 = vmatmul.mubr.msk.bf16.vlgmr.msra.gmra.mrb[0].mxu1 %vm301_vm4, %v276_v43 }
  0x96   :  { %455 = vmatpush1.bf16.msra.mxu0 %v449_v44  ;;  %486 = vmatprep.mubr.bf16.mxu0 %v819_v3  ;;  %v77_v3 = vand.u32 2147483647, %v73_v2 }
  0x98   :  { %v78_v7 = vsub.f32 0.0, %v77_v3 }
  0x9a   :  { %v79_v9 = vmul.f32 1.442695, %v78_v7 }
  0x9c   :  { %748 = vpow2.f32 %v79_v9 }
  0x9d   :  { %715 = vmatmul.mubr.msk.bf16.vlgmr.msra.gmra.mrb[4].mxu0 %vm301_vm4, %v276_v43  ;;  %v97_v43 = vsub.f32 1.0, %v74_v39  ;;  %vm645_vm4 = vcmp.eq.s32.totalorder %v959_v32, 0 }
  0xa6   :  { %v749_v18 = vpop.eup %748 }
  0xa7   :  { %v81_v21 = vadd.f32 1.0, %v749_v18  ;;  %v84_v30 = vmul.f32 -0.5, %v749_v18  ;;  %v87_v27 = vand.u32 2147483647, %v749_v18 }
  0xa9   :  { %v85_v25 = vadd.f32 1.0, %v84_v30  ;;  %vm88_vm6 = vcmp.lt.f32.partialorder %v87_v27, 0.0004427343 }
  0xab   :  { %v86_v33 = vmul.f32 %v749_v18, %v85_v25 }
  0xbd   :  { %v974_v8 = vpop.xlane.xlu0 %229 }
  0xbe   :  { %v231_v10 = vsub.f32 %v933_v24, %v974_v8  ;;  %v190_v24 = vrot.slane %v178_v20, 4 }
  0xc0   :  { %v232_v13 = vmul.f32 1.442695, %v231_v10  ;;  %v192_v29 = vsel %vm101_vm0, %v190_v24, 0.0 }
  0xc2   :  { %750 = vpow2.f32 %v232_v13 }
  0xc3   :  { %752 = vlog2.f32 %v81_v21  ;;  %v497_v21 = vunpack.c.1.s8 %v495_v0 }
  0xcc   :  { %v751_v22 = vpop.eup %750 }
  0xcd   :  { %234 = vadd.xlane.f32.xlu1 %v751_v22  ;;  %v753_v31 = vpop.eup %752 }
  0xce   :  { %v83_v28 = vmul.f32 0.6931472, %v753_v31 }
  0xd0   :  { %v89_v35 = vsel %vm88_vm6, %v86_v33, %v83_v28  ;;  %vm651_vm6 = vcmp.eq.s32.totalorder %v959_v32, 5 }
  0xd1   :  { %121 = vadd.xlane.f32.xlu1 %v120_v23  ;;  %v90_v36 = vadd.f32 %v89_v35, %v76_v34  ;;  %v498_v35 = vcvt.s32.f32 %v496_v15 }
  0xd3   :  { %v91_v37 = vsub.f32 %v73_v2, %v90_v36  ;;  %v93_v38 = vsub.f32 0.0, %v90_v36 }
  0xd5   :  { %193 = vadd.xlane.f32.xlu1 %v192_v29  ;;  %v92_v41 = vmax.f32 %v91_v37, -100.0  ;;  %v94_v42 = vmax.f32 %v93_v38, -100.0 }
  0xd7   :  { %v96_v44 = vmul.f32 %v92_v41, %v74_v39  ;;  %v98_v45 = vmul.f32 %v97_v43, %v94_v42  ;;  %v1031_v39 = vcvt.s32.f32 %v497_v21 }
  0xd9   :  { %v99_v48 = vadd.f32 %v98_v45, %v96_v44 }
  0xdb   :  { %v100_v49 = vmul.f32 %v99_v48, %v95_v47 }
  0xdd   :  { %v102_v50 = vsel %vm101_vm0, %v100_v49, 0.0  ;;  %vm209_vm0 = vcmp.eq.s32.totalorder %v959_v32, 4 }
  0xde   :  { %103 = vadd.xlane.f32.xlu0 %v102_v50  ;;  %vm1122_vm1 = vmor %vm206_vm15, %vm209_vm0 }
  0xe2   :  { %180 = vadd.xlane.f32.xlu0 %v179_v51 }
 0x120   :  { %v241_v53 = vpop.xlane.xlu0 %240 }
 0x121   :  { %vm255_vm7 = vcmp.ge.f32.partialorder %v241_v53, %v974_v8 }
 0x122   :  { %v705_v54 = vsel %vm255_vm7, 1.0, %v821_v40  ;;  %vm654_vm7 = vcmp.eq.s32.totalorder %v959_v32, 6 }
 0x123   :  { %v258_v55 = vmul.f32 %v705_v54, %v998_v52 }
 0x125   :  { %v259_v56 = vsel %vm244_vm8, %v258_v55, 0.0 }
 0x126   :  { %260 = vadd.xlane.f32.xlu1 %v259_v56 }
 0x15a   :  { %v235_v57 = vpop.xlane.xlu1 %234 }
 0x15b   :  { %754 = vlog2.f32 %v235_v57 }
 0x15e   :  { %v122_v14 = vpop.xlane.xlu1 %121 }
 0x15f   :  { %v123_v25 = vrot.slane %v122_v14, 4 }
 0x161   :  { %v1035_v43 = vadd.f32 %v123_v25, %v122_v14 }
 0x162   :  { %v194_v34 = vpop.xlane.xlu1 %193 }
 0x163   :  { %v195_v38 = vrot.slane %v194_v34, 4  ;;  %v125_v55 = vrot.slane %v1035_v43, 2 }
 0x165   :  { %v755_v58 = vpop.eup %754  ;;  %v1041_v50 = vadd.f32 %v195_v38, %v194_v34 }
 0x166   :  { %v237_v59 = vmul.f32 0.6931472, %v755_v58 }
 0x168   :  { %v1004_v60 = vpop.f32.mrb[0].mxu0  ;;  %v1006_v26 = vpop.f32.mrb[0].mxu1  ;;  %v238_v61 = vadd.f32 %v237_v59, %v974_v8  ;;  %v500_v8 = vld [vmem:[%s1172_s14] sm:$0xf] }
 0x169   :  { %v513_v62 = vand.u32 2147483647, %v1004_v60  ;;  %v1010_v63 = vpop.f32.mrb[1].mxu0  ;;  %v1012_v40 = vpop.f32.mrb[1].mxu1  ;;  %v559_v1 = vand.u32 2147483647, %v1006_v26  ;;  %v501_v20 = vunpack.c.0.s8 %v500_v8  ;;  %v502_v22 = vunpack.c.1.s8 %v500_v8 }
 0x16a   :  { %v350_v2 = vpop.f32.mrb[2].mxu0  ;;  %v421_v3 = vpop.f32.mrb[2].mxu1  ;;  %v514_v5 = vand.u32 2147483647, %v1010_v63  ;;  %v560_v12 = vand.u32 2147483647, %v1012_v40  ;;  %v242_v13 = vsub.f32 %v238_v61, %v241_v53  ;;  %v509_v49 = vmul.f32 %v498_v35, %v1004_v60 }
 0x16b   :  { %v515_v4 = vsub.f32 0.0, %v513_v62  ;;  %v351_v6 = vpop.f32.mrb[3].mxu0  ;;  %v422_v7 = vpop.f32.mrb[3].mxu1  ;;  %v561_v9 = vsub.f32 0.0, %v559_v1  ;;  %v503_v36 = vcvt.s32.f32 %v501_v20  ;;  %v1033_v41 = vcvt.s32.f32 %v502_v22 }
 0x16c   :  { %v516_v11 = vsub.f32 0.0, %v514_v5  ;;  %v562_v18 = vsub.f32 0.0, %v560_v12  ;;  %v243_v19 = vmul.f32 %v998_v52, %v242_v13  ;;  %v507_v48 = vmax.f32 %v1004_v60, 0.0  ;;  %v104_v51 = vpop.xlane.xlu0 %103 }
 0x16d   :  { %v517_v10 = vmul.f32 1.442695, %v515_v4  ;;  %v563_v16 = vmul.f32 1.442695, %v561_v9  ;;  %v505_v45 = vmax.f32 %v498_v35, %v503_v36  ;;  %v506_v46 = vmax.f32 %v1031_v39, %v1033_v41 }
 0x16e   :  { %v519_v17 = vmul.f32 1.442695, %v516_v11  ;;  %v565_v24 = vmul.f32 1.442695, %v562_v18  ;;  %v245_v29 = vsel %vm244_vm8, %v243_v19, 0.0  ;;  %v553_v54 = vmax.f32 %v1006_v26, 0.0 }
 0x16f   :  { %756 = vpow2.f32 %v517_v10  ;;  %246 = vadd.xlane.f32.xlu0 %v245_v29  ;;  %v105_v56 = vrot.slane %v104_v51, 4  ;;  %v555_v58 = vmul.f32 %v503_v36, %v1006_v26  ;;  %v508_v59 = vmax.f32 %v1010_v63, 0.0 }
 0x170   :  { %758 = vpow2.f32 %v563_v16  ;;  %v1024_v23 = vpop.f32.mrb[4].mxu0  ;;  %v510_v61 = vmul.f32 %v1031_v39, %v1010_v63  ;;  %v554_v0 = vmax.f32 %v1012_v40, 0.0  ;;  %v556_v1 = vmul.f32 %v1033_v41, %v1012_v40  ;;  %v181_v15 = vpop.xlane.xlu0 %180 }
 0x171   :  { %760 = vpow2.f32 %v519_v17  ;;  %v1027_v30 = vpop.f32.mrb[5].mxu0  ;;  %v605_v31 = vand.u32 2147483647, %v1024_v23  ;;  %v1052_v4 = vsub.f32 %v507_v48, %v509_v49  ;;  %v197_v26 = vrot.slane %v1041_v50, 2 }
 0x172   :  { %v492_v27 = vpop.f32.mrb[6].mxu0  ;;  %762 = vpow2.f32 %v565_v24  ;;  %v606_v28 = vand.u32 2147483647, %v1027_v30  ;;  %v106_v63 = vadd.f32 %v105_v56, %v104_v51  ;;  %v557_v9 = vsub.f32 %v553_v54, %v555_v58 }
 0x173   :  { %v493_v33 = vpop.f32.mrb[7].mxu0  ;;  %v607_v37 = vsub.f32 0.0, %v605_v31  ;;  %v1055_v10 = vsub.f32 %v508_v59, %v510_v61  ;;  %v1057_v12 = vsub.f32 %v554_v0, %v556_v1  ;;  %v182_v18 = vrot.slane %v181_v15, 4 }
 0x174   :  { %v608_v42 = vsub.f32 0.0, %v606_v28  ;;  %v599_v19 = vmax.f32 %v1024_v23, 0.0  ;;  %v107_v22 = vrot.slane %v106_v63, 2  ;;  %v1063_v29 = vmul.f32 %v505_v45, %v1024_v23 }
 0x175   :  { %v609_v44 = vmul.f32 1.442695, %v607_v37  ;;  %v183_v27 = vadd.f32 %v182_v18, %v181_v15  ;;  %v600_v33 = vmax.f32 %v1027_v30, 0.0  ;;  %v126_v54 = vadd.f32 %v125_v55, %v1035_v43 }
 0x176   :  { %v611_v47 = vmul.f32 1.442695, %v608_v42  ;;  %v108_v48 = vadd.f32 %v107_v22, %v106_v63  ;;  %v603_v35 = vsub.f32 %v599_v19, %v1063_v29  ;;  %vm657_vm8 = vcmp.eq.s32.totalorder %v959_v32, 7 }
 0x177   :  { %764 = vpow2.f32 %v609_v44  ;;  %v184_v44 = vrot.slane %v183_v27, 2  ;;  %v127_v1 = vrot.slane %v126_v54, 1 }
 0x178   :  { %766 = vpow2.f32 %v611_v47  ;;  %v109_v61 = vrot.slane %v108_v48, 1 }
 0x179   :  { %v757_v53 = vpop.eup %756  ;;  %v128_v63 = vadd.f32 %v127_v1, %v126_v54 }
 0x17a   :  { %v759_v57 = vpop.eup %758  ;;  %v521_v60 = vadd.f32 1.0, %v757_v53  ;;  %v524_v2 = vmul.f32 -0.5, %v757_v53  ;;  %v527_v13 = vand.u32 2147483647, %v757_v53 }
 0x17b   :  { %v761_v62 = vpop.eup %760  ;;  %v567_v3 = vadd.f32 1.0, %v759_v57  ;;  %v570_v8 = vmul.f32 -0.5, %v759_v57  ;;  %v573_v17 = vand.u32 2147483647, %v759_v57 }
 0x17c   :  { %768 = vlog2.f32 %v521_v60  ;;  %v530_v5 = vadd.f32 1.0, %v761_v62  ;;  %v763_v6 = vpop.eup %762  ;;  %v533_v7 = vmul.f32 -0.5, %v761_v62  ;;  %v525_v40 = vadd.f32 1.0, %v524_v2 }
 0x17d   :  { %770 = vlog2.f32 %v567_v3  ;;  %v576_v11 = vadd.f32 1.0, %v763_v6  ;;  %v579_v14 = vmul.f32 -0.5, %v763_v6  ;;  %v536_v16 = vand.u32 2147483647, %v761_v62 }
 0x17e   :  { %772 = vlog2.f32 %v530_v5  ;;  %v534_v20 = vadd.f32 1.0, %v533_v7  ;;  %v571_v21 = vadd.f32 1.0, %v570_v8  ;;  %v582_v31 = vand.u32 2147483647, %v763_v6 }
 0x17f   :  { %774 = vlog2.f32 %v576_v11  ;;  %v580_v25 = vadd.f32 1.0, %v579_v14  ;;  %v526_v34 = vmul.f32 %v757_v53, %v525_v40  ;;  %vm1068_vm9 = vcmp.lt.f32.partialorder %v527_v13, 0.0004427343 }
 0x180   :  { %vm1073_vm10 = vcmp.lt.f32.partialorder %v536_v16, 0.0004427343  ;;  %vm1077_vm11 = vcmp.lt.f32.partialorder %v573_v17, 0.0004427343  ;;  %v535_v45 = vmul.f32 %v761_v62, %v534_v20  ;;  %v572_v47 = vmul.f32 %v759_v57, %v571_v21 }
 0x181   :  { %v1060_v24 = vpop.eup %764  ;;  %v581_v51 = vmul.f32 %v763_v6, %v580_v25  ;;  %vm1082_vm12 = vcmp.lt.f32.partialorder %v582_v31, 0.0004427343  ;;  %v185_v60 = vadd.f32 %v184_v44, %v183_v27  ;;  %v198_v2 = vadd.f32 %v197_v26, %v1041_v50 }
 0x182   :  { %v1065_v28 = vpop.eup %766  ;;  %v613_v36 = vadd.f32 1.0, %v1060_v24  ;;  %v616_v59 = vmul.f32 -0.5, %v1060_v24  ;;  %v110_v6 = vadd.f32 %v109_v61, %v108_v48  ;;  %v619_v20 = vand.u32 2147483647, %v1060_v24 }
 0x183   :  { %v622_v42 = vadd.f32 1.0, %v1065_v28  ;;  %v625_v57 = vmul.f32 -0.5, %v1065_v28  ;;  %v186_v7 = vrot.slane %v185_v60, 1  ;;  %v199_v11 = vrot.slane %v198_v2, 1 }
 0x184   :  { %776 = vlog2.f32 %v613_v36  ;;  %719 = vpush %v110_v6  ;;  %v617_v16 = vadd.f32 1.0, %v616_v59  ;;  %v628_v25 = vand.u32 2147483647, %v1065_v28  ;;  %vm620_vm13 = vcmp.lt.f32.partialorder %v619_v20, 0.0004427343 }
 0x185   :  { %778 = vlog2.f32 %v622_v42  ;;  %v187_v50 = vadd.f32 %v186_v7, %v185_v60  ;;  %721 = vpush %v128_v63  ;;  %v200_v17 = vadd.f32 %v199_v11, %v198_v2  ;;  %v673_v53 = vstv %s718_s3 }
 0x186   :  { %v769_v49 = vpop.eup %768  ;;  %vm629_vm14 = vcmp.lt.f32.partialorder %v628_v25, 0.0004427343  ;;  %v681_v59 = vstv %s716_s10 }
 0x187   :  { %v771_v56 = vpop.eup %770  ;;  %v523_v58 = vmul.f32 0.6931472, %v769_v49  ;;  %723 = vpush %v187_v50 }
 0x188   :  { %v773_v0 = vpop.eup %772  ;;  %v569_v62 = vmul.f32 0.6931472, %v771_v56  ;;  %725 = vpush %v200_v17  ;;  %v676_v56 = vstv %s717_s29 }
 0x189   :  { %v529_v3 = vsel %vm1068_vm9, %v526_v34, %v523_v58  ;;  %v532_v5 = vmul.f32 0.6931472, %v773_v0  ;;  %v775_v43 = vpop.eup %774  ;;  %v618_v34 = vmul.f32 %v1060_v24, %v617_v16 }
 0x18a   :  { %v539_v55 = vadd.f32 %v529_v3, %v1052_v4  ;;  %v575_v8 = vsel %vm1077_vm11, %v572_v47, %v569_v62  ;;  %v578_v13 = vmul.f32 0.6931472, %v775_v43  ;;  %v602_v4 = vmul.f32 %v506_v46, %v1027_v30 }
 0x18b   :  { %v538_v40 = vsel %vm1073_vm10, %v535_v45, %v532_v5  ;;  %v585_v14 = vadd.f32 %v575_v8, %v557_v9  ;;  %v626_v9 = vadd.f32 1.0, %v625_v57 }
 0x18c   :  { %v540_v26 = vadd.f32 %v538_v40, %v1055_v10  ;;  %v541_v15 = vmul.f32 %v998_v52, %v539_v55  ;;  %v584_v18 = vsel %vm1082_vm12, %v581_v51, %v578_v13  ;;  %v604_v37 = vsub.f32 %v600_v33, %v602_v4 }
 0x18d   :  { %v586_v10 = vadd.f32 %v584_v18, %v1057_v12  ;;  %v587_v22 = vmul.f32 %v998_v52, %v585_v14  ;;  %v627_v12 = vmul.f32 %v1065_v28, %v626_v9  ;;  %v672_v51 = vstv %s666_s28 }
 0x18e   :  { %v542_v21 = vmul.f32 %v998_v52, %v540_v26  ;;  %v777_v31 = vpop.eup %776  ;;  %v674_v54 = vsel %vm671_vm3, %v672_v51, %v673_v53 }
 0x18f   :  { %v779_v27 = vpop.eup %778  ;;  %v588_v41 = vmul.f32 %v998_v52, %v586_v10  ;;  %v615_v46 = vmul.f32 0.6931472, %v777_v31  ;;  %v677_v58 = vsel %vm203_vm2, %v676_v56, %v674_v54 }
 0x190   :  { %v543_v39 = vadd.f32 %v542_v21, %v541_v15  ;;  %v624_v36 = vmul.f32 0.6931472, %v779_v27  ;;  %v1134_v61 = vsel %vm1122_vm1, %v681_v59, %v677_v58 }
 0x191   :  { %v589_v38 = vadd.f32 %v588_v41, %v587_v22  ;;  %v621_v42 = vsel %vm620_vm13, %v618_v34, %v615_v46 }
 0x192   :  { %544 = vadd.xlane.f32.xlu0 %v543_v39  ;;  %v630_v44 = vsel %vm629_vm14, %v627_v12, %v624_v36  ;;  %v631_v45 = vadd.f32 %v621_v42, %v603_v35 }
 0x193   :  { %590 = vadd.xlane.f32.xlu1 %v589_v38  ;;  %v632_v47 = vadd.f32 %v630_v44, %v604_v37 }
 0x194   :  { %v633_v24 = vmul.f32 %v998_v52, %v631_v45 }
 0x195   :  { %v634_v23 = vmul.f32 %v998_v52, %v632_v47 }
 0x197   :  { %v635_v19 = vadd.f32 %v634_v23, %v633_v24 }
 0x199   :  { %636 = vadd.xlane.f32.xlu0 %v635_v19 }
 0x1b3   :  { %v261_v60 = vpop.xlane.xlu1 %260 }
 0x1b4   :  { %v262_v0 = vrot.slane %v261_v60, 4 }
 0x1b5   :  { %s720_s13 = spop %719 }
 0x1b6   :  { %v204_v29 = vstv %s720_s13  ;;  %s722_s14 = spop %721  ;;  %v263_v62 = vadd.f32 %v262_v0, %v261_v60 }
 0x1b7   :  { %v205_v28 = vsel %vm203_vm2, %v204_v29, 0.0  ;;  %v207_v33 = vstv %s722_s14 }
 0x1b8   :  { %s724_s1 = spop %723  ;;  %v208_v52 = vsel %vm206_vm15, %v207_v33, %v205_v28  ;;  %v264_v57 = vrot.slane %v263_v62, 2 }
 0x1b9   :  { %s726_s27 = spop %725 }
 0x1ba   :  { %s202_s4 = sadd.f32 %s726_s27, %s724_s1  ;;  %v265_v5 = vadd.f32 %v264_v57, %v263_v62 }
 0x1bc   :  { %v210_v48 = vstv %s202_s4  ;;  %v266_v43 = vrot.slane %v265_v5, 1 }
 0x1bd   :  { %v211_v49 = vsel %vm209_vm0, %v210_v48, %v208_v52 }
 0x1be   :  { %212 = vst [vmem:[#allocation2] sm:$0x1] %v211_v49  ;;  %v267_v63 = vadd.f32 %v266_v43, %v265_v5 }
 0x1c5   :  { %v660_v47 = vld [vmem:[#allocation2] sm:$0x1] }
 0x1fc   :  { %v247_v1 = vpop.xlane.xlu0 %246 }
 0x1fd   :  { %v248_v2 = vrot.slane %v247_v1, 4 }
 0x1ff   :  { %v249_v3 = vadd.f32 %v248_v2, %v247_v1 }
 0x201   :  { %v250_v6 = vrot.slane %v249_v3, 2 }
 0x203   :  { %v251_v7 = vadd.f32 %v250_v6, %v249_v3 }
 0x205   :  { %v252_v55 = vrot.slane %v251_v7, 1 }
 0x207   :  { %v253_v8 = vadd.f32 %v252_v55, %v251_v7 }
 0x209   :  { %727 = vpush %v253_v8 }
 0x20a   :  { %729 = vpush %v267_v63 }
 0x21f   :  { %v545_v11 = vpop.xlane.xlu0 %544 }
 0x220   :  { %v546_v40 = vrot.slane %v545_v11, 4  ;;  %v591_v13 = vpop.xlane.xlu1 %590 }
 0x221   :  { %v592_v50 = vrot.slane %v591_v13, 4 }
 0x222   :  { %v547_v14 = vadd.f32 %v546_v40, %v545_v11 }
 0x223   :  { %v593_v15 = vadd.f32 %v592_v50, %v591_v13 }
 0x224   :  { %v548_v26 = vrot.slane %v547_v14, 2 }
 0x225   :  { %v594_v16 = vrot.slane %v593_v15, 2 }
 0x226   :  { %v549_v17 = vadd.f32 %v548_v26, %v547_v14  ;;  %v637_v4 = vpop.xlane.xlu0 %636 }
 0x227   :  { %v595_v18 = vadd.f32 %v594_v16, %v593_v15  ;;  %v638_v20 = vrot.slane %v637_v4, 4 }
 0x228   :  { %v550_v9 = vrot.slane %v549_v17, 1 }
 0x229   :  { %v639_v21 = vadd.f32 %v638_v20, %v637_v4  ;;  %v596_v22 = vrot.slane %v595_v18, 1 }
 0x22a   :  { %v551_v10 = vadd.f32 %v550_v9, %v549_v17 }
 0x22b   :  { %v640_v25 = vrot.slane %v639_v21, 2  ;;  %v597_v31 = vadd.f32 %v596_v22, %v595_v18 }
 0x22c   :  { %731 = vpush %v551_v10 }
 0x22d   :  { %v641_v27 = vadd.f32 %v640_v25, %v639_v21  ;;  %733 = vpush %v597_v31 }
 0x22f   :  { %v642_v39 = vrot.slane %v641_v27, 1 }
 0x231   :  { %v643_v41 = vadd.f32 %v642_v39, %v641_v27 }
 0x233   :  { %735 = vpush %v643_v41 }
 0x23a   :  { %s728_s11 = spop %727 }
 0x23b   :  { %v646_v46 = vstv %s728_s11  ;;  %s730_s12 = spop %729 }
 0x23c   :  { %v647_v34 = vsel %vm645_vm4, %v646_v46, 0.0  ;;  %v649_v35 = vstv %s730_s12 }
 0x23d   :  { %v650_v12 = vsel %vm648_vm5, %v649_v35, %v647_v34 }
 0x25d   :  { %s732_s30 = spop %731 }
 0x25e   :  { %v652_v36 = vstv %s732_s30  ;;  %s734_s16 = spop %733 }
 0x25f   :  { %v653_v37 = vsel %vm651_vm6, %v652_v36, %v650_v12  ;;  %v655_v38 = vstv %s734_s16 }
 0x260   :  { %v656_v42 = vsel %vm654_vm7, %v655_v38, %v653_v37 }
 0x264   :  { %s736_s17 = spop %735 }
 0x265   :  { %v658_v44 = vstv %s736_s17 }
 0x266   :  { %v659_v45 = vsel %vm657_vm8, %v658_v44, %v656_v42 }
 0x267   :  { %v661_v24 = vadd.f32 %v660_v47, %v659_v45 }
 0x269   :  { %662 = vst [vmem:[#allocation2] sm:$0x1] %v661_v24 }
 0x270   :  { %v670_v23 = vld [vmem:[#allocation2] sm:$0x1] }
 0x271   :  { %v683_v19 = vmul.f32 %v1134_v61, %v670_v23 }
 0x273   :  { %v684_v30 = vmul.f32 100.0, %v683_v19 }
 0x275   :  { %v685_v29 = vsub.f32 100.0, %v684_v30 }
 0x277   :  { %v686_v28 = vsel %vm648_vm5, %v685_v29, %v683_v19 }
 0x278   :  { %687 = vst [vmem:[#allocation7] sm:$0x1] %v686_v28 }
 0x279   :  { %803 = shalt.err (!%p800_p9)
}
 0x27a   :  { %s804_s21 = scalar_lea.hbm %s1173_s15, 16 }
 0x27b   :  { %p805_p10 = scmp.ne.s32.totalorder %s1173_s15, %s804_s21  ;;  %p808_p11 = scmp.lt.u32.totalorder %s804_s21, %s1173_s15 }
 0x27d   :  { %p810_p12 = pnand %p808_p11, %p805_p10 }
 0x27f   :  { %813 = shalt.err (!%p810_p12)
}
 0x280   :  { %697 = dma.vmem_to_hbm [thread:$0]  %s695_s19, 16, %s1173_s15, [#allocation5]  }
 0x281   :  { %816 = dma.done.wait [#allocation5], 16  }
 0x282   :  { %817 = vsyncadd [#allocation5], 4294967280 }
 0x283   :  { %701 = vsyncpa [#allocation5], 1 }
 0x284   :  { %702 = vsyncpa [#allocation6], 1 }

</bundles_post_ra>
